<compile_context>
chip_gen: v6e
topology: v6e:2x2x1
jax: 0.10.0
libtpu: 0.0.40
codegen_flags: <defaults>
</compile_context>

<pallas_src>
import numpy as np
import jax
import jax.numpy as jnp
from jax.experimental import pallas as pl
from jax.experimental.pallas import tpu as pltpu

EPS = 1e-5
NEG_SLOPE = 0.01     # nn.LeakyReLU() default
C_PAD = 128          # lane-dense padding for the FINAL output store only


# --------------------------------------------------------------------------
# Fused kernel
# --------------------------------------------------------------------------
def _bn_lrelu(acc, gamma, beta):
    """Training-mode BatchNorm over rows (two-pass, f32) + LeakyReLU."""
    inv_m = 1.0 / acc.shape[0]
    mean = jnp.sum(acc, axis=0, keepdims=True) * inv_m
    d = acc - mean
    var = jnp.sum(d * d, axis=0, keepdims=True) * inv_m
    y = d * jax.lax.rsqrt(var + EPS) * gamma + beta
    return jnp.where(y >= 0.0, y, NEG_SLOPE * y)


def _encoder_kernel(rows1_ref, w1_ref, g1_ref, b1_ref,
                    sel_ref, w2_ref, g2_ref, b2_ref,
                    w3_ref, g3_ref, b3_ref, o_ref):
    """Fully fused 3-stage encoder.  All refs are whole arrays in VMEM.

    rows1_ref : [M1, 16]        bf16  stage-1 im2col rows (N*H1*W1, Cin*16)
    w1_ref    : [16, C1]        bf16  stage-1 weight (real channel count)
    sel_ref   : [16*M2, 1]      i32   per-offset source-row index into h1 (-1 = pad)
    w2_ref    : [16, C1, C2]    bf16  stage-2 weight per offset (real sizes)
    w3_ref    : [C2, 128]       bf16  stage-3 1x1 weight (out lanes padded to 128)
    g*_ref/b*_ref : [1, C]      f32   BN gamma/beta (stage 3 padded to 128)
    o_ref     : [M2, 128]       f32   output rows (lane-dense; real ch = 0..C3-1)
    """
    m1 = rows1_ref.shape[0]
    n_off, c1, _ = w2_ref.shape
    m2 = sel_ref.shape[0] // n_off

    # ---- stage 1: 4x4/s2 conv (one matmul on prebuilt patches) + BN + LReLU
    acc1 = jnp.dot(rows1_ref[...], w1_ref[...],
                   preferred_element_type=jnp.float32)          # [M1, C1] f32
    h1 = _bn_lrelu(acc1, g1_ref[...], b1_ref[...]).astype(jnp.bfloat16)

    # ---- stage 2: 4x4/s2 conv, patches gathered on-chip.
    # One stacked selection matmul: G[16*M2, M1] is 0/1, built in-kernel from
    # the tiny index vector (row all-zero for conv padding positions).
    col = jax.lax.broadcasted_iota(jnp.int32, (n_off * m2, m1), 1)
    G = (col == sel_ref[...]).astype(jnp.bfloat16)               # [16*M2, M1]
    P = jnp.dot(G, h1, preferred_element_type=jnp.float32)       # [16*M2, C1]
    Pk = P.astype(jnp.bfloat16).reshape(n_off, m2, c1)           # [16, M2, C1]
    # Batched weight contraction over all 16 offsets, then tree-sum over k.
    acc2 = jnp.sum(
        jnp.einsum("kmc,kcd->kmd", Pk, w2_ref[...],
                   preferred_element_type=jnp.float32),
        axis=0)                                                  # [M2, C2] f32
    h2 = _bn_lrelu(acc2, g2_ref[...], b2_ref[...]).astype(jnp.bfloat16)

    # ---- stage 3: 1x1 conv + BN + LReLU  (lane-dense [M2, 128] store)
    acc3 = jnp.dot(h2, w3_ref[...], preferred_element_type=jnp.float32)
    o_ref[...] = _bn_lrelu(acc3, g3_ref[...], b3_ref[...])


# --------------------------------------------------------------------------
# Host-side glue (runs inside one jit around the pallas_call)
# --------------------------------------------------------------------------
def _im2col(x_nchw, k, s, p):
    """[N,C,H,W] -> ([N*Ho*Wo, C*k*k], Ho, Wo); last-axis order (C, kh, kw)."""
    N, C, H, W = x_nchw.shape
    xp = jnp.pad(x_nchw, ((0, 0), (0, 0), (p, p), (p, p)))
    Ho = (H + 2 * p - k) // s + 1
    Wo = (W + 2 * p - k) // s + 1
    slabs = []
    for di in range(k):
        for dj in range(k):
            slabs.append(xp[:, :, di:di + s * Ho:s, dj:dj + s * Wo:s])
    pt = jnp.stack(slabs, axis=2)                # [N, C, k*k, Ho, Wo]
    pt = pt.transpose(0, 3, 4, 1, 2)             # [N, Ho, Wo, C, k*k]
    return pt.reshape(N * Ho * Wo, C * k * k), Ho, Wo


def _patch_select_indices(N, Hin, Win, k, s, p):
    """idx[(di*k+dj)*M2 + m2] = source row in h1 (raster order), -1 = padding."""
    Ho = (Hin + 2 * p - k) // s + 1
    Wo = (Win + 2 * p - k) // s + 1
    idx = np.full((k * k, N * Ho * Wo), -1, np.int32)
    for di in range(k):
        for dj in range(k):
            kk = di * k + dj
            for n in range(N):
                for oh in range(Ho):
                    ih = oh * s - p + di
                    if not (0 <= ih < Hin):
                        continue
                    for ow in range(Wo):
                        iw = ow * s - p + dj
                        if not (0 <= iw < Win):
                            continue
                        idx[kk, (n * Ho + oh) * Wo + ow] = (n * Hin + ih) * Win + iw
    return jnp.asarray(idx.reshape(-1, 1)), Ho, Wo    # [16*M2, 1] int32 (2 KB)


def init_encoder_params(key, in_channels=1, hidden_dims=(32, 64), embedding_dim=64):
    """Synthetic parameters with the PyTorch module's shapes (no conv bias:
    it is a no-op under training-mode BatchNorm)."""
    c1, c2 = hidden_dims
    k1, k2, k3, kg = jax.random.split(key, 4)

    def conv_w(k, co, ci, ksz):
        fan_in = ci * ksz * ksz
        return jax.random.normal(k, (co, ci, ksz, ksz), jnp.float32) / jnp.sqrt(fan_in)

    g = jax.random.split(kg, 6)
    return dict(
        w1=conv_w(k1, c1, in_channels, 4),
        gamma1=1.0 + 0.1 * jax.random.normal(g[0], (c1,), jnp.float32),
        beta1=0.1 * jax.random.normal(g[1], (c1,), jnp.float32),
        w2=conv_w(k2, c2, c1, 4),
        gamma2=1.0 + 0.1 * jax.random.normal(g[2], (c2,), jnp.float32),
        beta2=0.1 * jax.random.normal(g[3], (c2,), jnp.float32),
        w3=conv_w(k3, embedding_dim, c2, 1),
        gamma3=1.0 + 0.1 * jax.random.normal(g[4], (embedding_dim,), jnp.float32),
        beta3=0.1 * jax.random.normal(g[5], (embedding_dim,), jnp.float32),
    )


@jax.jit
def encoder_apply(x_nchw, params):
    """x: [N, Cin, H, W] f32 -> [N, embedding_dim, H/4, W/4] f32 (NCHW)."""
    x = x_nchw.astype(jnp.float32)
    N = x.shape[0]
    c1 = params["w1"].shape[0]       # 32
    c2 = params["w2"].shape[0]       # 64
    c3 = params["w3"].shape[0]       # 64

    # stage-1 patches on host (raw input is tiny; Cin=1)
    rows1, H1, W1 = _im2col(x, 4, 2, 1)                        # [M1, 16]
    rows1 = rows1.astype(jnp.bfloat16)

    # stage-1 weight at real channel count (no lane padding needed for values)
    w1 = params["w1"].reshape(c1, -1).T.astype(jnp.bfloat16)   # [16, c1]
    g1 = params["gamma1"].reshape(1, c1)
    b1 = params["beta1"].reshape(1, c1)

    # stage-2 weight, slim contraction dim: [kk=16, ci=c1, co=c2]
    w2 = jnp.transpose(params["w2"], (2, 3, 1, 0)).reshape(16, c1, c2)
    w2 = w2.astype(jnp.bfloat16)
    g2 = params["gamma2"].reshape(1, c2)
    b2 = params["beta2"].reshape(1, c2)

    # stage-3 weight: real contraction (c2), output lanes padded to 128 so the
    # final store is an unmasked lane-dense [M2, 128] vst.
    w3 = params["w3"].reshape(c3, c2).T                        # [ci, co]
    w3p = jnp.zeros((c2, C_PAD), jnp.float32).at[:, :c3].set(w3).astype(jnp.bfloat16)
    g3 = jnp.ones((1, C_PAD), jnp.float32).at[0, :c3].set(params["gamma3"])
    b3 = jnp.zeros((1, C_PAD), jnp.float32).at[0, :c3].set(params["beta3"])

    # stage-2 on-chip patch selection indices (2 KB, replaces 128 KB gsel)
    sel, H2, W2 = _patch_select_indices(N, H1, W1, 4, 2, 1)    # [16*M2, 1]
    M2 = N * H2 * W2

    vmem = pl.BlockSpec(memory_space=pltpu.MemorySpace.VMEM)
    out_rows = pl.pallas_call(
        _encoder_kernel,
        out_shape=jax.ShapeDtypeStruct((M2, C_PAD), jnp.float32),
        in_specs=[vmem] * 11,
        out_specs=vmem,
    )(rows1, w1, g1, b1, sel, w2, g2, b2, w3p, g3, b3)

    # lane-dense [M2, 128] -> NCHW [N, c3, H2, W2] (single final transpose)
    return out_rows[:, :c3].reshape(N, H2, W2, c3).transpose(0, 3, 1, 2)


# --------------------------------------------------------------------------
# Pure-JAX reference (training-mode BN, biased variance, no bias)
# --------------------------------------------------------------------------
def _reference(x, params):
    def conv(a, w, stride, pad):
        return jax.lax.conv_general_dilated(
            a, w, window_strides=(stride, stride),
            padding=((pad, pad), (pad, pad)),
            dimension_numbers=("NCHW", "OIHW", "NCHW"),
            precision=jax.lax.Precision.HIGHEST)

    def bn_lrelu(a, gamma, beta):
        mean = a.mean(axis=(0, 2, 3), keepdims=True)
        var = ((a - mean) ** 2).mean(axis=(0, 2, 3), keepdims=True)
        y = (a - mean) / jnp.sqrt(var + EPS)
        y = y * gamma[None, :, None, None] + beta[None, :, None, None]
        return jnp.where(y >= 0.0, y, NEG_SLOPE * y)

    h = bn_lrelu(conv(x, params["w1"], 2, 1), params["gamma1"], params["beta1"])
    h = bn_lrelu(conv(h, params["w2"], 2, 1), params["gamma2"], params["beta2"])
    h = bn_lrelu(conv(h, params["w3"], 1, 0), params["gamma3"], params["beta3"])
    return h


if __name__ == "__main__":
    key = jax.random.PRNGKey(0)
    key, kx = jax.random.split(key)

    # small shapes consistent with the module: N=2, Cin=1, 16x16 input
    x = jax.random.normal(kx, (2, 1, 16, 16), jnp.float32)
    params = init_encoder_params(key, in_channels=1, hidden_dims=(32, 64),
                                 embedding_dim=64)

    out = jax.block_until_ready(encoder_apply(x, params))

    assert out.shape == (2, 64, 4, 4), out.shape
    assert bool(jnp.all(jnp.isfinite(out)))

    ref = jax.block_until_ready(_reference(x, params))
    max_err = float(jnp.max(jnp.abs(out - ref)))
    # bf16 MXU inputs with f32 accumulation: small absolute deviation expected.
    assert max_err < 0.15, f"mismatch vs reference: max abs err = {max_err}"

    print("KERNEL_OK")
</pallas_src>

<mosaic_0001>
module attributes {stable_mosaic.version = 11 : i64} {
  func.func @_encoder_kernel(%arg0: memref<128x16xbf16, #tpu.memory_space<vmem>>, %arg1: memref<16x32xbf16, #tpu.memory_space<vmem>>, %arg2: memref<1x32xf32, #tpu.memory_space<vmem>>, %arg3: memref<1x32xf32, #tpu.memory_space<vmem>>, %arg4: memref<512x1xi32, #tpu.memory_space<vmem>>, %arg5: memref<16x32x64xbf16, #tpu.memory_space<vmem>>, %arg6: memref<1x64xf32, #tpu.memory_space<vmem>>, %arg7: memref<1x64xf32, #tpu.memory_space<vmem>>, %arg8: memref<64x128xbf16, #tpu.memory_space<vmem>>, %arg9: memref<1x128xf32, #tpu.memory_space<vmem>>, %arg10: memref<1x128xf32, #tpu.memory_space<vmem>>, %arg11: memref<32x128xf32, #tpu.memory_space<vmem>>) attributes {dimension_semantics = [], scalar_prefetch = 0 : i64, scratch_operands = 0 : i64, tpu.core_type = #tpu.core_type<tc>} {
    %c0 = arith.constant 0 : index
    %c0_0 = arith.constant 0 : index
    %0 = vector.load %arg0[%c0, %c0_0] : memref<128x16xbf16, #tpu.memory_space<vmem>>, vector<128x16xbf16>
    %c0_1 = arith.constant 0 : index
    %c0_2 = arith.constant 0 : index
    %1 = vector.load %arg1[%c0_1, %c0_2] : memref<16x32xbf16, #tpu.memory_space<vmem>>, vector<16x32xbf16>
    %cst = arith.constant dense<0.000000e+00> : vector<128x32xf32>
    %2 = tpu.matmul %0, %1, %cst {dimension_numbers = #tpu.dot_dimension_numbers<[1], [0], [0], [1], [0, 0, 1, 1], [], []>} : vector<128x16xbf16>, vector<16x32xbf16>, vector<128x32xf32> -> vector<128x32xf32>
    %c0_3 = arith.constant 0 : index
    %c0_4 = arith.constant 0 : index
    %3 = vector.load %arg2[%c0_3, %c0_4] : memref<1x32xf32, #tpu.memory_space<vmem>>, vector<1x32xf32>
    %c0_5 = arith.constant 0 : index
    %c0_6 = arith.constant 0 : index
    %4 = vector.load %arg3[%c0_5, %c0_6] : memref<1x32xf32, #tpu.memory_space<vmem>>, vector<1x32xf32>
    %cst_7 = arith.constant dense<0.000000e+00> : vector<32xf32>
    %5 = vector.multi_reduction <add>, %2, %cst_7 [0] : vector<128x32xf32> to vector<32xf32>
    %6 = vector.shape_cast %5 : vector<32xf32> to vector<1x32xf32>
    %cst_8 = arith.constant 7.812500e-03 : f32
    %7 = vector.broadcast %cst_8 : f32 to vector<1x32xf32>
    %8 = arith.mulf %6, %7 : vector<1x32xf32>
    %9 = vector.broadcast %8 : vector<1x32xf32> to vector<128x32xf32>
    %10 = arith.subf %2, %9 : vector<128x32xf32>
    %11 = arith.mulf %10, %10 : vector<128x32xf32>
    %cst_9 = arith.constant dense<0.000000e+00> : vector<32xf32>
    %12 = vector.multi_reduction <add>, %11, %cst_9 [0] : vector<128x32xf32> to vector<32xf32>
    %13 = vector.shape_cast %12 : vector<32xf32> to vector<1x32xf32>
    %cst_10 = arith.constant 7.812500e-03 : f32
    %14 = vector.broadcast %cst_10 : f32 to vector<1x32xf32>
    %15 = arith.mulf %13, %14 : vector<1x32xf32>
    %cst_11 = arith.constant 9.99999974E-6 : f32
    %16 = vector.broadcast %cst_11 : f32 to vector<1x32xf32>
    %17 = arith.addf %15, %16 : vector<1x32xf32>
    %18 = math.rsqrt %17 : vector<1x32xf32>
    %19 = vector.broadcast %18 : vector<1x32xf32> to vector<128x32xf32>
    %20 = arith.mulf %10, %19 : vector<128x32xf32>
    %21 = vector.broadcast %3 : vector<1x32xf32> to vector<128x32xf32>
    %22 = arith.mulf %20, %21 : vector<128x32xf32>
    %23 = vector.broadcast %4 : vector<1x32xf32> to vector<128x32xf32>
    %24 = arith.addf %22, %23 : vector<128x32xf32>
    %cst_12 = arith.constant 0.000000e+00 : f32
    %25 = vector.broadcast %cst_12 : f32 to vector<128x32xf32>
    %26 = arith.cmpf oge, %24, %25 : vector<128x32xf32>
    %cst_13 = arith.constant 0.00999999977 : f32
    %27 = vector.broadcast %cst_13 : f32 to vector<128x32xf32>
    %28 = arith.mulf %27, %24 : vector<128x32xf32>
    %29 = arith.select %26, %24, %28 : vector<128x32xi1>, vector<128x32xf32>
    %30 = arith.truncf %29 : vector<128x32xf32> to vector<128x32xbf16>
    %31 = tpu.iota {dimensions = array<i32: 1>} : vector<512x128xi32>
    %c0_14 = arith.constant 0 : index
    %c0_15 = arith.constant 0 : index
    %32 = vector.load %arg4[%c0_14, %c0_15] : memref<512x1xi32, #tpu.memory_space<vmem>>, vector<512x1xi32>
    %33 = vector.broadcast %32 : vector<512x1xi32> to vector<512x128xi32>
    %34 = arith.cmpi eq, %31, %33 : vector<512x128xi32>
    %35 = arith.extui %34 : vector<512x128xi1> to vector<512x128xi32>
    %36 = arith.sitofp %35 : vector<512x128xi32> to vector<512x128xf32>
    %37 = arith.truncf %36 : vector<512x128xf32> to vector<512x128xbf16>
    %cst_16 = arith.constant dense<0.000000e+00> : vector<512x32xf32>
    %38 = tpu.matmul %37, %30, %cst_16 {dimension_numbers = #tpu.dot_dimension_numbers<[1], [0], [0], [1], [0, 0, 1, 1], [], []>} : vector<512x128xbf16>, vector<128x32xbf16>, vector<512x32xf32> -> vector<512x32xf32>
    %39 = arith.truncf %38 : vector<512x32xf32> to vector<512x32xbf16>
    %40 = vector.shape_cast %39 : vector<512x32xbf16> to vector<16x32x32xbf16>
    %c0_17 = arith.constant 0 : index
    %c0_18 = arith.constant 0 : index
    %c0_19 = arith.constant 0 : index
    %41 = vector.load %arg5[%c0_17, %c0_18, %c0_19] : memref<16x32x64xbf16, #tpu.memory_space<vmem>>, vector<16x32x64xbf16>
    "tpu.trace_start"() <{level = 10 : i32, message = "kmc,kcd->kmd"}> : () -> ()
    %cst_20 = arith.constant dense<0.000000e+00> : vector<16x32x64xf32>
    %42 = tpu.matmul %40, %41, %cst_20 {dimension_numbers = #tpu.dot_dimension_numbers<[2], [1], [1], [2], [0, 0, 0, 1, 1, 2], [0], [0]>} : vector<16x32x32xbf16>, vector<16x32x64xbf16>, vector<16x32x64xf32> -> vector<16x32x64xf32>
    "tpu.trace_stop"() : () -> ()
    %cst_21 = arith.constant dense<0.000000e+00> : vector<32x64xf32>
    %43 = vector.multi_reduction <add>, %42, %cst_21 [0] : vector<16x32x64xf32> to vector<32x64xf32>
    %c0_22 = arith.constant 0 : index
    %c0_23 = arith.constant 0 : index
    %44 = vector.load %arg6[%c0_22, %c0_23] : memref<1x64xf32, #tpu.memory_space<vmem>>, vector<1x64xf32>
    %c0_24 = arith.constant 0 : index
    %c0_25 = arith.constant 0 : index
    %45 = vector.load %arg7[%c0_24, %c0_25] : memref<1x64xf32, #tpu.memory_space<vmem>>, vector<1x64xf32>
    %cst_26 = arith.constant dense<0.000000e+00> : vector<64xf32>
    %46 = vector.multi_reduction <add>, %43, %cst_26 [0] : vector<32x64xf32> to vector<64xf32>
    %47 = vector.shape_cast %46 : vector<64xf32> to vector<1x64xf32>
    %cst_27 = arith.constant 3.125000e-02 : f32
    %48 = vector.broadcast %cst_27 : f32 to vector<1x64xf32>
    %49 = arith.mulf %47, %48 : vector<1x64xf32>
    %50 = vector.broadcast %49 : vector<1x64xf32> to vector<32x64xf32>
    %51 = arith.subf %43, %50 : vector<32x64xf32>
    %52 = arith.mulf %51, %51 : vector<32x64xf32>
    %cst_28 = arith.constant dense<0.000000e+00> : vector<64xf32>
    %53 = vector.multi_reduction <add>, %52, %cst_28 [0] : vector<32x64xf32> to vector<64xf32>
    %54 = vector.shape_cast %53 : vector<64xf32> to vector<1x64xf32>
    %cst_29 = arith.constant 3.125000e-02 : f32
    %55 = vector.broadcast %cst_29 : f32 to vector<1x64xf32>
    %56 = arith.mulf %54, %55 : vector<1x64xf32>
    %cst_30 = arith.constant 9.99999974E-6 : f32
    %57 = vector.broadcast %cst_30 : f32 to vector<1x64xf32>
    %58 = arith.addf %56, %57 : vector<1x64xf32>
    %59 = math.rsqrt %58 : vector<1x64xf32>
    %60 = vector.broadcast %59 : vector<1x64xf32> to vector<32x64xf32>
    %61 = arith.mulf %51, %60 : vector<32x64xf32>
    %62 = vector.broadcast %44 : vector<1x64xf32> to vector<32x64xf32>
    %63 = arith.mulf %61, %62 : vector<32x64xf32>
    %64 = vector.broadcast %45 : vector<1x64xf32> to vector<32x64xf32>
    %65 = arith.addf %63, %64 : vector<32x64xf32>
    %cst_31 = arith.constant 0.000000e+00 : f32
    %66 = vector.broadcast %cst_31 : f32 to vector<32x64xf32>
    %67 = arith.cmpf oge, %65, %66 : vector<32x64xf32>
    %cst_32 = arith.constant 0.00999999977 : f32
    %68 = vector.broadcast %cst_32 : f32 to vector<32x64xf32>
    %69 = arith.mulf %68, %65 : vector<32x64xf32>
    %70 = arith.select %67, %65, %69 : vector<32x64xi1>, vector<32x64xf32>
    %71 = arith.truncf %70 : vector<32x64xf32> to vector<32x64xbf16>
    %c0_33 = arith.constant 0 : index
    %c0_34 = arith.constant 0 : index
    %72 = vector.load %arg8[%c0_33, %c0_34] : memref<64x128xbf16, #tpu.memory_space<vmem>>, vector<64x128xbf16>
    %cst_35 = arith.constant dense<0.000000e+00> : vector<32x128xf32>
    %73 = tpu.matmul %71, %72, %cst_35 {dimension_numbers = #tpu.dot_dimension_numbers<[1], [0], [0], [1], [0, 0, 1, 1], [], []>} : vector<32x64xbf16>, vector<64x128xbf16>, vector<32x128xf32> -> vector<32x128xf32>
    %c0_36 = arith.constant 0 : index
    %c0_37 = arith.constant 0 : index
    %74 = vector.load %arg9[%c0_36, %c0_37] : memref<1x128xf32, #tpu.memory_space<vmem>>, vector<1x128xf32>
    %c0_38 = arith.constant 0 : index
    %c0_39 = arith.constant 0 : index
    %75 = vector.load %arg10[%c0_38, %c0_39] : memref<1x128xf32, #tpu.memory_space<vmem>>, vector<1x128xf32>
    %cst_40 = arith.constant dense<0.000000e+00> : vector<128xf32>
    %76 = vector.multi_reduction <add>, %73, %cst_40 [0] : vector<32x128xf32> to vector<128xf32>
    %77 = vector.shape_cast %76 : vector<128xf32> to vector<1x128xf32>
    %cst_41 = arith.constant 3.125000e-02 : f32
    %78 = vector.broadcast %cst_41 : f32 to vector<1x128xf32>
    %79 = arith.mulf %77, %78 : vector<1x128xf32>
    %80 = vector.broadcast %79 : vector<1x128xf32> to vector<32x128xf32>
    %81 = arith.subf %73, %80 : vector<32x128xf32>
    %82 = arith.mulf %81, %81 : vector<32x128xf32>
    %cst_42 = arith.constant dense<0.000000e+00> : vector<128xf32>
    %83 = vector.multi_reduction <add>, %82, %cst_42 [0] : vector<32x128xf32> to vector<128xf32>
    %84 = vector.shape_cast %83 : vector<128xf32> to vector<1x128xf32>
    %cst_43 = arith.constant 3.125000e-02 : f32
    %85 = vector.broadcast %cst_43 : f32 to vector<1x128xf32>
    %86 = arith.mulf %84, %85 : vector<1x128xf32>
    %cst_44 = arith.constant 9.99999974E-6 : f32
    %87 = vector.broadcast %cst_44 : f32 to vector<1x128xf32>
    %88 = arith.addf %86, %87 : vector<1x128xf32>
    %89 = math.rsqrt %88 : vector<1x128xf32>
    %90 = vector.broadcast %89 : vector<1x128xf32> to vector<32x128xf32>
    %91 = arith.mulf %81, %90 : vector<32x128xf32>
    %92 = vector.broadcast %74 : vector<1x128xf32> to vector<32x128xf32>
    %93 = arith.mulf %91, %92 : vector<32x128xf32>
    %94 = vector.broadcast %75 : vector<1x128xf32> to vector<32x128xf32>
    %95 = arith.addf %93, %94 : vector<32x128xf32>
    %cst_45 = arith.constant 0.000000e+00 : f32
    %96 = vector.broadcast %cst_45 : f32 to vector<32x128xf32>
    %97 = arith.cmpf oge, %95, %96 : vector<32x128xf32>
    %cst_46 = arith.constant 0.00999999977 : f32
    %98 = vector.broadcast %cst_46 : f32 to vector<32x128xf32>
    %99 = arith.mulf %98, %95 : vector<32x128xf32>
    %100 = arith.select %97, %95, %99 : vector<32x128xi1>, vector<32x128xf32>
    %c0_47 = arith.constant 0 : index
    %c0_48 = arith.constant 0 : index
    %101 = vector.load %arg11[%c0_47, %c0_48] : memref<32x128xf32, #tpu.memory_space<vmem>>, vector<32x128xf32>
    tpu.vector_store %arg11[%c0_47, %c0_48], %100 {strides = array<i32>} : memref<32x128xf32, #tpu.memory_space<vmem>>, vector<32x128xf32>,
    return
  }
}

</mosaic_0001>

<bundles_post_ra>
// kernel: encoder_apply.1
= control target key start
LH: loop header
LB: loop body
LE: loop exit
PB: predicated region body
PF: predicated region fallthrough
CT: control target
= control target key end

     0   :  { %vm104_vm0 = vcmask 130048   ;;  %v3430_v3 = vmov 0   ;;  %s4313_s0 = inlined_call_operand.vmem [shape: bf16[128,16], index: 0, kind: input, shape index: {}]   ;;  %s4314_s1 = inlined_call_operand.vmem [shape: bf16[16,32], index: 1, kind: input, shape index: {}]   ;;  %s4315_s2 = inlined_call_operand.vmem [shape: f32[1,32], index: 2, kind: input, shape index: {}]   ;;  %s4316_s3 = inlined_call_operand.vmem [shape: f32[1,32], index: 3, kind: input, shape index: {}]   ;;  %s4317_s4 = inlined_call_operand.vmem [shape: s32[512,1], index: 4, kind: input, shape index: {}]   ;;  %s4318_s5 = inlined_call_operand.vmem [shape: bf16[16,32,64], index: 5, kind: input, shape index: {}]   ;;  %s4319_s6 = inlined_call_operand.vmem [shape: f32[1,64], index: 6, kind: input, shape index: {}]   ;;  %s4320_s7 = inlined_call_operand.vmem [shape: f32[1,64], index: 7, kind: input, shape index: {}]   ;;  %s4321_s8 = inlined_call_operand.vmem [shape: bf16[64,128], index: 8, kind: input, shape index: {}]   ;;  %s4322_s9 = inlined_call_operand.vmem [shape: f32[1,128], index: 9, kind: input, shape index: {}]   ;;  %s4323_s10 = inlined_call_operand.vmem [shape: f32[1,128], index: 10, kind: input, shape index: {}]   ;;  %s4324_s11 = inlined_call_operand.hbm [shape: f32[32,128], index: 11, kind: output, shape index: {}]  }
   0x1   :  { %v3357_v0 = vld [vmem:[%s4314_s1] sm:$0xff]   ;;  %v3359_v2 = vld [vmem:[%s4313_s0 + $0x8] sm:$0xff]   ;;  %3356 = vset.pattern.permute.xlu1 %v3430_v3  ;;  %v3360_v4 = vld [vmem:[%s4313_s0 + $0x10] sm:$0xff]   ;;  %3355 = vset.pattern.permute.xlu0 %v3430_v3 }
   0x2   :  { %v3358_v1 = vld [vmem:[%s4313_s0] sm:$0xff]   ;;  %3112 = vmatprep.subr.bf16.mxu0 %v3357_v0  ;;  %v459_v5 = vld [vmem:[%s4317_s4 + $0x10] sm:$0xff]  ;;  %v3361_v7 = vld [vmem:[%s4313_s0 + $0x18] sm:$0xff]  }
   0x3   :  { %3113 = vmatpush3.bf16.msra.mxu0 %v3357_v0  ;;  %3114 = vmatprep.mubr.msk.bf16.mxu0 %vm104_vm0, %v3358_v1  ;;  %v457_v6 = vld [vmem:[%s4317_s4] sm:$0xff]  ;;  %v460_v9 = vld [vmem:[%s4317_s4 + $0x18] sm:$0xff]  ;;  %v458_v10 = vld [vmem:[%s4317_s4 + $0x8] sm:$0xff] }
   0x4   :  { %528 = vperm.xlu1 %3356, %v459_v5   ;;  %522 = vperm.xlu0 %3355, %v457_v6   ;;  %v3362_v8 = vld [vmem:[%s4313_s0 + $0x20] sm:$0xff]   ;;  %v462_v11 = vld [vmem:[%s4317_s4 + $0x28] sm:$0xff]  ;;  %v3364_v14 = vld [vmem:[%s4313_s0 + $0x30] sm:$0xff]  }
   0x5   :  { %v461_v12 = vld [vmem:[%s4317_s4 + $0x20] sm:$0xff]  ;;  %v3363_v13 = vld [vmem:[%s4313_s0 + $0x28] sm:$0xff]   ;;  %v464_v15 = vld [vmem:[%s4317_s4 + $0x38] sm:$0xff] }
   0x6   :  { %3115 = vmatmul.mubr.msk.bf16.vlgmr.msra.gmra.mxu0 %vm104_vm0, %v3359_v2  ;;  %v463_v16 = vld [vmem:[%s4317_s4 + $0x30] sm:$0xff]  ;;  %v466_v17 = vld [vmem:[%s4317_s4 + $0x48] sm:$0xff]  ;;  %v3365_v18 = vld [vmem:[%s4313_s0 + $0x38] sm:$0xff]  }
   0x7   :  { %3118 = vmatprep.mubr.msk.bf16.mxu0 %vm104_vm0, %v3360_v4  ;;  %v465_v19 = vld [vmem:[%s4317_s4 + $0x40] sm:$0xff]  ;;  %v468_v20 = vld [vmem:[%s4317_s4 + $0x58] sm:$0xff]  ;;  %v467_v21 = vld [vmem:[%s4317_s4 + $0x50] sm:$0xff] }
   0x8   :  { %531 = vperm.xlu1 %3356, %v460_v9   ;;  %525 = vperm.xlu0 %3355, %v458_v10   ;;  %v470_v22 = vld [vmem:[%s4317_s4 + $0x68] sm:$0xff]  ;;  %v469_v23 = vld [vmem:[%s4317_s4 + $0x60] sm:$0xff]  ;;  %v472_v24 = vld [vmem:[%s4317_s4 + $0x78] sm:$0xff] }
   0x9   :  { %v471_v25 = vld [vmem:[%s4317_s4 + $0x70] sm:$0xff]  ;;  %v474_v26 = vld [vmem:[%s4317_s4 + $0x88] sm:$0xff]  ;;  %v473_v27 = vld [vmem:[%s4317_s4 + $0x80] sm:$0xff] }
   0xa   :  { %v476_v28 = vld [vmem:[%s4317_s4 + $0x98] sm:$0xff]  ;;  %v475_v29 = vld [vmem:[%s4317_s4 + $0x90] sm:$0xff]  ;;  %v478_v30 = vld [vmem:[%s4317_s4 + $0xa8] sm:$0xff] }
   0xb   :  { %v477_v31 = vld [vmem:[%s4317_s4 + $0xa0] sm:$0xff] }
   0xc   :  { %537 = vperm.xlu1 %3356, %v462_v11   ;;  %534 = vperm.xlu0 %3355, %v461_v12  }
   0xe   :  { %3119 = vmatmul.mubr.msk.bf16.gmra.mxu0 %vm104_vm0, %v3361_v7 }
   0xf   :  { %3122 = vmatprep.mubr.msk.bf16.mxu0 %vm104_vm0, %v3362_v8 }
  0x10   :  { %543 = vperm.xlu1 %3356, %v464_v15   ;;  %540 = vperm.xlu0 %3355, %v463_v16  }
  0x14   :  { %549 = vperm.xlu1 %3356, %v466_v17   ;;  %546 = vperm.xlu0 %3355, %v465_v19  }
  0x16   :  { %3123 = vmatmul.mubr.msk.bf16.gmra.mxu0 %vm104_vm0, %v3363_v13 }
  0x17   :  { %3126 = vmatprep.mubr.msk.bf16.mxu0 %vm104_vm0, %v3364_v14 }
  0x18   :  { %555 = vperm.xlu1 %3356, %v468_v20   ;;  %552 = vperm.xlu0 %3355, %v467_v21  }
  0x1c   :  { %561 = vperm.xlu1 %3356, %v470_v22   ;;  %558 = vperm.xlu0 %3355, %v469_v23  }
  0x1e   :  { %3127 = vmatmul.mubr.msk.bf16.gmra.mxu0 %vm104_vm0, %v3365_v18 }
  0x20   :  { %567 = vperm.xlu1 %3356, %v472_v24   ;;  %564 = vperm.xlu0 %3355, %v471_v25  }
  0x24   :  { %573 = vperm.xlu1 %3356, %v474_v26   ;;  %570 = vperm.xlu0 %3355, %v473_v27  }
  0x28   :  { %579 = vperm.xlu1 %3356, %v476_v28   ;;  %576 = vperm.xlu0 %3355, %v475_v29  }
  0x29   :  { %16 = vsyncpa [#allocation3], 0  ;;  %v480_v32 = vld [vmem:[%s4317_s4 + $0xb8] sm:$0xff]  ;;  %v479_v33 = vld [vmem:[%s4317_s4 + $0xb0] sm:$0xff]  ;;  %vm228_vm1 = vcmask 261120   ;;  %s3432_s22 = smov [#allocation2]  }
  0x2a   :  { %v482_v34 = vld [vmem:[%s4317_s4 + $0xc8] sm:$0xff]  ;;  %v481_v35 = vld [vmem:[%s4317_s4 + $0xc0] sm:$0xff]  ;;  %v484_v36 = vld [vmem:[%s4317_s4 + $0xd8] sm:$0xff]  ;;  %s2761_s23 = sshll.u32 %s3432_s22, 4  ;;  %s2762_s23 = int_to_ptr.vmem [resolvable:$true] %s2761_s23 }
  0x2b   :  { %v483_v37 = vld [vmem:[%s4317_s4 + $0xd0] sm:$0xff]  ;;  %v486_v38 = vld [vmem:[%s4317_s4 + $0xe8] sm:$0xff]  ;;  %v485_v39 = vld [vmem:[%s4317_s4 + $0xe0] sm:$0xff]  ;;  %p3413_p1 = scmp.lt.s32.totalorder %s2762_s23, %s2762_s23 }
  0x2c   :  { %585 = vperm.xlu1 %3356, %v478_v30   ;;  %582 = vperm.xlu0 %3355, %v477_v31   ;;  %v488_v40 = vld [vmem:[%s4317_s4 + $0xf8] sm:$0xff]  ;;  %v487_v41 = vld [vmem:[%s4317_s4 + $0xf0] sm:$0xff]  ;;  %v490_v42 = vld [vmem:[%s4317_s4 + $0x108] sm:$0xff] }
  0x2d   :  { %v489_v43 = vld [vmem:[%s4317_s4 + $0x100] sm:$0xff]  ;;  %v492_v44 = vld [vmem:[%s4317_s4 + $0x118] sm:$0xff]  ;;  %v491_v45 = vld [vmem:[%s4317_s4 + $0x110] sm:$0xff] }
  0x2e   :  { %v494_v46 = vld [vmem:[%s4317_s4 + $0x128] sm:$0xff]  ;;  %v493_v47 = vld [vmem:[%s4317_s4 + $0x120] sm:$0xff]  ;;  %v496_v48 = vld [vmem:[%s4317_s4 + $0x138] sm:$0xff] }
  0x2f   :  { %v495_v49 = vld [vmem:[%s4317_s4 + $0x130] sm:$0xff]  ;;  %v498_v50 = vld [vmem:[%s4317_s4 + $0x148] sm:$0xff]  ;;  %v497_v51 = vld [vmem:[%s4317_s4 + $0x140] sm:$0xff] }
  0x30   :  { %591 = vperm.xlu1 %3356, %v480_v32   ;;  %588 = vperm.xlu0 %3355, %v479_v33   ;;  %v500_v52 = vld [vmem:[%s4317_s4 + $0x158] sm:$0xff]  ;;  %v499_v53 = vld [vmem:[%s4317_s4 + $0x150] sm:$0xff]  ;;  %v502_v54 = vld [vmem:[%s4317_s4 + $0x168] sm:$0xff] }
  0x31   :  { %v501_v55 = vld [vmem:[%s4317_s4 + $0x160] sm:$0xff]  ;;  %v504_v56 = vld [vmem:[%s4317_s4 + $0x178] sm:$0xff]  ;;  %v503_v57 = vld [vmem:[%s4317_s4 + $0x170] sm:$0xff] }
  0x32   :  { %v506_v58 = vld [vmem:[%s4317_s4 + $0x188] sm:$0xff]  ;;  %v505_v59 = vld [vmem:[%s4317_s4 + $0x180] sm:$0xff]  ;;  %v508_v60 = vld [vmem:[%s4317_s4 + $0x198] sm:$0xff] }
  0x33   :  { %v507_v61 = vld [vmem:[%s4317_s4 + $0x190] sm:$0xff]  ;;  %v510_v62 = vld [vmem:[%s4317_s4 + $0x1a8] sm:$0xff]  ;;  %v509_v63 = vld [vmem:[%s4317_s4 + $0x1a0] sm:$0xff] }
  0x34   :  { %597 = vperm.xlu1 %3356, %v482_v34   ;;  %594 = vperm.xlu0 %3355, %v481_v35   ;;  %v512_v0 = vld [vmem:[%s4317_s4 + $0x1b8] sm:$0xff]  ;;  %v511_v1 = vld [vmem:[%s4317_s4 + $0x1b0] sm:$0xff]  ;;  %v514_v2 = vld [vmem:[%s4317_s4 + $0x1c8] sm:$0xff] }
  0x35   :  { %v513_v3 = vld [vmem:[%s4317_s4 + $0x1c0] sm:$0xff]  ;;  %v516_v4 = vld [vmem:[%s4317_s4 + $0x1d8] sm:$0xff]  ;;  %v515_v5 = vld [vmem:[%s4317_s4 + $0x1d0] sm:$0xff] }
  0x36   :  { %v518_v6 = vld [vmem:[%s4317_s4 + $0x1e8] sm:$0xff]  ;;  %v517_v7 = vld [vmem:[%s4317_s4 + $0x1e0] sm:$0xff]  ;;  %v520_v8 = vld [vmem:[%s4317_s4 + $0x1f8] sm:$0xff] }
  0x37   :  { %v519_v9 = vld [vmem:[%s4317_s4 + $0x1f0] sm:$0xff] }
  0x38   :  { %603 = vperm.xlu1 %3356, %v484_v36   ;;  %600 = vperm.xlu0 %3355, %v483_v37   ;;  %v455_v36 = vlaneseq }
  0x3c   :  { %609 = vperm.xlu1 %3356, %v486_v38   ;;  %606 = vperm.xlu0 %3355, %v485_v39  }
  0x40   :  { %615 = vperm.xlu1 %3356, %v488_v40   ;;  %612 = vperm.xlu0 %3355, %v487_v41  }
  0x44   :  { %621 = vperm.xlu1 %3356, %v490_v42   ;;  %618 = vperm.xlu0 %3355, %v489_v43  }
  0x48   :  { %627 = vperm.xlu1 %3356, %v492_v44   ;;  %624 = vperm.xlu0 %3355, %v491_v45   ;;  %v3753_v44 = vand.u32 127, %v455_v36 }
  0x4c   :  { %633 = vperm.xlu1 %3356, %v494_v46   ;;  %630 = vperm.xlu0 %3355, %v493_v47  }
  0x50   :  { %639 = vperm.xlu1 %3356, %v496_v48   ;;  %636 = vperm.xlu0 %3355, %v495_v49  }
  0x54   :  { %645 = vperm.xlu1 %3356, %v498_v50   ;;  %642 = vperm.xlu0 %3355, %v497_v51  }
  0x58   :  { %651 = vperm.xlu1 %3356, %v500_v52   ;;  %648 = vperm.xlu0 %3355, %v499_v53  }
  0x5c   :  { %657 = vperm.xlu1 %3356, %v502_v54   ;;  %654 = vperm.xlu0 %3355, %v501_v55  }
  0x60   :  { %663 = vperm.xlu1 %3356, %v504_v56   ;;  %660 = vperm.xlu0 %3355, %v503_v57   ;;  %v3431_v57 = vmov 1.0|1.0  }
  0x64   :  { %669 = vperm.xlu1 %3356, %v506_v58   ;;  %666 = vperm.xlu0 %3355, %v505_v59  }
  0x68   :  { %675 = vperm.xlu1 %3356, %v508_v60   ;;  %672 = vperm.xlu0 %3355, %v507_v61  }
  0x6c   :  { %681 = vperm.xlu1 %3356, %v510_v62   ;;  %678 = vperm.xlu0 %3355, %v509_v63  }
  0x70   :  { %687 = vperm.xlu1 %3356, %v512_v0   ;;  %684 = vperm.xlu0 %3355, %v511_v1  }
  0x74   :  { %693 = vperm.xlu1 %3356, %v514_v2   ;;  %690 = vperm.xlu0 %3355, %v513_v3  }
  0x78   :  { %699 = vperm.xlu1 %3356, %v516_v4   ;;  %696 = vperm.xlu0 %3355, %v515_v5  }
  0x7c   :  { %705 = vperm.xlu1 %3356, %v518_v6   ;;  %702 = vperm.xlu0 %3355, %v517_v7  }
  0x7f   :  { %v523_v38 = vpop.permute.xlu0 %522 }
  0x80   :  { %711 = vperm.xlu1 %3356, %v520_v8   ;;  %708 = vperm.xlu0 %3355, %v519_v9   ;;  %vm713_vm2 = vcmp.eq.s32.totalorder %v3753_v44, %v523_v38 }
  0x83   :  { %v526_v49 = vpop.permute.xlu0 %525 }
  0x84   :  { %vm714_vm3 = vcmp.eq.s32.totalorder %v3753_v44, %v526_v49 }
  0x85   :  { %vm2855_vm4 = vmpackc.low %vm714_vm3, %vm713_vm2 }
  0x86   :  { %3146 = vmatprep.mubr.msk.bf16.mxu1 %vm2855_vm4, %v3431_v57 }
  0xc6   :  { %v3722_v10 = vpop.f32.mrf.mxu0 }
  0xc7   :  { %v232_v18 = vsel %vm228_vm1, %v3722_v10, 0.0 }
  0xc8   :  { %v3724_v11 = vpop.f32.mrf.mxu0 }
  0xc9   :  { %v229_v14 = vsel %vm228_vm1, %v3724_v11, 0.0 }
  0xca   :  { %v3726_v12 = vpop.f32.mrf.mxu0 }
  0xcb   :  { %v234_v21 = vsel %vm228_vm1, %v3726_v12, 0.0 }
  0xcc   :  { %v166_v13 = vpop.f32.mrf.mxu0 }
  0xcd   :  { %v230_v15 = vsel %vm228_vm1, %v166_v13, 0.0 }
  0xce   :  { %v231_v16 = vadd.f32 %v230_v15, %v229_v14  ;;  %v3731_v17 = vpop.f32.mrf.mxu0 }
  0xcf   :  { %v240_v30 = vsel %vm228_vm1, %v3731_v17, 0.0 }
  0xd0   :  { %v233_v19 = vadd.f32 %v232_v18, %v231_v16  ;;  %v179_v20 = vpop.f32.mrf.mxu0 }
  0xd1   :  { %v236_v24 = vsel %vm228_vm1, %v179_v20, 0.0 }
  0xd2   :  { %v235_v22 = vadd.f32 %v234_v21, %v233_v19  ;;  %v3737_v23 = vpop.f32.mrf.mxu0 }
  0xd3   :  { %v242_v33 = vsel %vm228_vm1, %v3737_v23, 0.0 }
  0xd4   :  { %v237_v25 = vadd.f32 %v236_v24, %v235_v22  ;;  %v182_v26 = vpop.f32.mrf.mxu0 }
  0xd5   :  { %v238_v27 = vsel %vm228_vm1, %v182_v26, 0.0 }
  0xd6   :  { %v239_v28 = vadd.f32 %v238_v27, %v237_v25  ;;  %v3741_v29 = vpop.f32.mrf.mxu0 }
  0xd7   :  { %v248_v45 = vsel %vm228_vm1, %v3741_v29, 0.0 }
  0xd8   :  { %v241_v31 = vadd.f32 %v240_v30, %v239_v28  ;;  %v195_v32 = vpop.f32.mrf.mxu0 }
  0xd9   :  { %v244_v37 = vsel %vm228_vm1, %v195_v32, 0.0 }
  0xda   :  { %v243_v34 = vadd.f32 %v242_v33, %v241_v31  ;;  %v3747_v35 = vpop.f32.mrf.mxu0 }
  0xdb   :  { %v250_v48 = vsel %vm228_vm1, %v3747_v35, 0.0 }
  0xdc   :  { %v245_v39 = vadd.f32 %v244_v37, %v243_v34  ;;  %v198_v40 = vpop.f32.mrf.mxu0 }
  0xdd   :  { %v246_v41 = vsel %vm228_vm1, %v198_v40, 0.0 }
  0xde   :  { %v247_v42 = vadd.f32 %v246_v41, %v245_v39  ;;  %v3751_v43 = vpop.f32.mrf.mxu0 }
  0xdf   :  { %v256_v58 = vsel %vm228_vm1, %v3751_v43, 0.0 }
  0xe0   :  { %v249_v46 = vadd.f32 %v248_v45, %v247_v42  ;;  %v3757_v47 = vpop.f32.mrf.mxu0 }
  0xe1   :  { %v252_v52 = vsel %vm228_vm1, %v3757_v47, 0.0 }
  0xe2   :  { %v251_v50 = vadd.f32 %v250_v48, %v249_v46  ;;  %v3762_v51 = vpop.f32.mrf.mxu0 }
  0xe3   :  { %v258_v60 = vsel %vm228_vm1, %v3762_v51, 0.0 }
  0xe4   :  { %v253_v53 = vadd.f32 %v252_v52, %v251_v50  ;;  %v214_v54 = vpop.f32.mrf.mxu0 }
  0xe5   :  { %v254_v55 = vsel %vm228_vm1, %v214_v54, 0.0 }
  0xe6   :  { %v255_v56 = vadd.f32 %v254_v55, %v253_v53 }
  0xe8   :  { %v257_v59 = vadd.f32 %v256_v58, %v255_v56 }
  0xea   :  { %v259_v61 = vadd.f32 %v258_v60, %v257_v59 }
  0xec   :  { %v260_v62 = vrot.slane %v259_v61, 4 }
  0xee   :  { %v261_v63 = vadd.f32 %v260_v62, %v259_v61 }
  0xf0   :  { %v262_v0 = vrot.slane %v261_v63, 2 }
  0xf2   :  { %v263_v1 = vadd.f32 %v262_v0, %v261_v63 }
  0xf4   :  { %v264_v2 = vrot.slane %v263_v1, 1 }
  0xf6   :  { %v265_v3 = vadd.f32 %v264_v2, %v263_v1 }
  0xf8   :  { %v266_v4 = vmul.f32 0.0078125, %v265_v3 }
  0xfa   :  { %v3774_v5 = vsub.f32 %v3724_v11, %v266_v4  ;;  %v3776_v6 = vsub.f32 %v166_v13, %v266_v4  ;;  %v3779_v7 = vsub.f32 %v3722_v10, %v266_v4  ;;  %v3782_v8 = vsub.f32 %v3726_v12, %v266_v4 }
  0xfb   :  { %v3788_v15 = vsub.f32 %v179_v20, %v266_v4  ;;  %v3792_v16 = vsub.f32 %v182_v26, %v266_v4  ;;  %v3799_v19 = vsub.f32 %v3731_v17, %v266_v4  ;;  %v3805_v24 = vsub.f32 %v3737_v23, %v266_v4 }
  0xfc   :  { %v283_v9 = vmul.f32 %v3774_v5, %v3774_v5  ;;  %v284_v14 = vmul.f32 %v3776_v6, %v3776_v6  ;;  %v285_v11 = vmul.f32 %v3779_v7, %v3779_v7  ;;  %v286_v10 = vmul.f32 %v3782_v8, %v3782_v8 }
  0xfd   :  { %v287_v20 = vmul.f32 %v3788_v15, %v3788_v15  ;;  %v288_v25 = vmul.f32 %v3792_v16, %v3792_v16  ;;  %v3810_v28 = vsub.f32 %v195_v32, %v266_v4  ;;  %v289_v17 = vmul.f32 %v3799_v19, %v3799_v19 }
  0xfe   :  { %v299_v13 = vsel %vm228_vm1, %v283_v9, 0.0  ;;  %v300_v12 = vsel %vm228_vm1, %v284_v14, 0.0  ;;  %v302_v21 = vsel %vm228_vm1, %v285_v11, 0.0  ;;  %v304_v26 = vsel %vm228_vm1, %v286_v10, 0.0  ;;  %v3839_v10 = vpop.permute.xlu1 %528 }
  0xff   :  { %v301_v18 = vadd.f32 %v300_v12, %v299_v13  ;;  %v306_v30 = vsel %vm228_vm1, %v287_v20, 0.0  ;;  %v3815_v33 = vsub.f32 %v198_v40, %v266_v4  ;;  %v290_v23 = vmul.f32 %v3805_v24, %v3805_v24 }
 0x100   :  { %v308_v34 = vsel %vm228_vm1, %v288_v25, 0.0  ;;  %v277_v37 = vsub.f32 %v3741_v29, %v266_v4  ;;  %v291_v32 = vmul.f32 %v3810_v28, %v3810_v28  ;;  %v310_v38 = vsel %vm228_vm1, %v289_v17, 0.0 }
 0x101   :  { %v303_v22 = vadd.f32 %v302_v21, %v301_v18  ;;  %v278_v41 = vsub.f32 %v3747_v35, %v266_v4  ;;  %v292_v40 = vmul.f32 %v3815_v33, %v3815_v33  ;;  %v312_v42 = vsel %vm228_vm1, %v290_v23, 0.0 }
 0x102   :  { %v279_v46 = vsub.f32 %v3757_v47, %v266_v4  ;;  %v293_v48 = vmul.f32 %v277_v37, %v277_v37  ;;  %v314_v49 = vsel %vm228_vm1, %v291_v32, 0.0  ;;  %v280_v50 = vsub.f32 %v214_v54, %v266_v4  ;;  %v3841_v18 = vpop.permute.xlu1 %531 }
 0x103   :  { %v305_v27 = vadd.f32 %v304_v26, %v303_v22  ;;  %v294_v52 = vmul.f32 %v278_v41, %v278_v41  ;;  %v316_v53 = vsel %vm228_vm1, %v292_v40, 0.0  ;;  %v281_v56 = vsub.f32 %v3751_v43, %v266_v4  ;;  %v3845_v26 = vpop.permute.xlu0 %534 }
 0x104   :  { %v295_v35 = vmul.f32 %v279_v46, %v279_v46  ;;  %v318_v58 = vsel %vm228_vm1, %v293_v48, 0.0  ;;  %v282_v60 = vsub.f32 %v3762_v51, %v266_v4  ;;  %v296_v61 = vmul.f32 %v280_v50, %v280_v50  ;;  %v3873_v48 = vld [vmem:[%s4316_s3] ss:$0 sm:$0xff] }
 0x105   :  { %v307_v31 = vadd.f32 %v306_v30, %v305_v27  ;;  %v320_v47 = vsel %vm228_vm1, %v294_v52, 0.0  ;;  %v297_v63 = vmul.f32 %v281_v56, %v281_v56 }
 0x106   :  { %v322_v0 = vsel %vm228_vm1, %v295_v35, 0.0  ;;  %v298_v1 = vmul.f32 %v282_v60, %v282_v60  ;;  %v324_v2 = vsel %vm228_vm1, %v296_v61, 0.0  ;;  %v3843_v25 = vpop.permute.xlu1 %537 }
 0x107   :  { %v309_v36 = vadd.f32 %v308_v34, %v307_v31  ;;  %v326_v43 = vsel %vm228_vm1, %v297_v63, 0.0  ;;  %v3849_v30 = vpop.permute.xlu0 %540 }
 0x108   :  { %v328_v14 = vsel %vm228_vm1, %v298_v1, 0.0 }
 0x109   :  { %v311_v39 = vadd.f32 %v310_v38, %v309_v36  ;;  %v3860_v36 = vld [vmem:[%s4315_s2] ss:$0 sm:$0xff] }
 0x10a   :  { %v3847_v17 = vpop.permute.xlu1 %543 }
 0x10b   :  { %v313_v45 = vadd.f32 %v312_v42, %v311_v39  ;;  %v3853_v23 = vpop.permute.xlu0 %546 }
 0x10d   :  { %v315_v29 = vadd.f32 %v314_v49, %v313_v45 }
 0x10e   :  { %v3851_v31 = vpop.permute.xlu1 %549 }
 0x10f   :  { %v317_v55 = vadd.f32 %v316_v53, %v315_v29  ;;  %v3865_v39 = vpop.permute.xlu0 %552 }
 0x111   :  { %v319_v59 = vadd.f32 %v318_v58, %v317_v55 }
 0x112   :  { %v3863_v38 = vpop.permute.xlu1 %555 }
 0x113   :  { %v321_v62 = vadd.f32 %v320_v47, %v319_v59 }
 0x115   :  { %v323_v54 = vadd.f32 %v322_v0, %v321_v62 }
 0x116   :  { %v3897_v0 = vpop.permute.xlu1 %561 }
 0x117   :  { %v325_v3 = vadd.f32 %v324_v2, %v323_v54  ;;  %v3899_v54 = vpop.permute.xlu0 %558 }
 0x119   :  { %v327_v9 = vadd.f32 %v326_v43, %v325_v3 }
 0x11b   :  { %v329_v11 = vadd.f32 %v328_v14, %v327_v9 }
 0x11d   :  { %v330_v51 = vrot.slane %v329_v11, 4 }
 0x11f   :  { %v331_v4 = vadd.f32 %v330_v51, %v329_v11 }
 0x121   :  { %v332_v13 = vrot.slane %v331_v4, 2 }
 0x123   :  { %v333_v12 = vadd.f32 %v332_v13, %v331_v4 }
 0x125   :  { %v334_v20 = vrot.slane %v333_v12, 1 }
 0x127   :  { %v335_v21 = vadd.f32 %v334_v20, %v333_v12 }
 0x129   :  { %v336_v22 = vmul.f32 0.0078125, %v335_v21 }
 0x12b   :  { %v337_v27 = vadd.f32 1e-05, %v336_v22 }
 0x12d   :  { %3402 = vrsqrt.f32 %v337_v27 }
 0x13a   :  { %v3855_v34 = vpop.eup %3402 }
 0x13b   :  { %v352_v32 = vmul.f32 %v3855_v34, %v280_v50  ;;  %v353_v40 = vmul.f32 %v3855_v34, %v281_v56  ;;  %v354_v42 = vmul.f32 %v3855_v34, %v282_v60  ;;  %v351_v45 = vmul.f32 %v3855_v34, %v279_v46 }
 0x13c   :  { %v349_v49 = vmul.f32 %v3855_v34, %v277_v37  ;;  %v350_v29 = vmul.f32 %v3855_v34, %v278_v41  ;;  %v347_v50 = vmul.f32 %v3855_v34, %v3810_v28  ;;  %v348_v52 = vmul.f32 %v3855_v34, %v3815_v33 }
 0x13d   :  { %v374_v53 = vmul.f32 %v3860_v36, %v352_v32  ;;  %v375_v55 = vmul.f32 %v3860_v36, %v353_v40  ;;  %v376_v46 = vmul.f32 %v3860_v36, %v354_v42  ;;  %v373_v56 = vmul.f32 %v3860_v36, %v351_v45  ;;  %v3903_v40 = vpop.permute.xlu1 %567  ;;  %v3905_v42 = vpop.permute.xlu0 %564 }
 0x13e   :  { %v371_v35 = vmul.f32 %v3860_v36, %v349_v49  ;;  %v372_v37 = vmul.f32 %v3860_v36, %v350_v29  ;;  %v369_v41 = vmul.f32 %v3860_v36, %v347_v50  ;;  %v370_v58 = vmul.f32 %v3860_v36, %v348_v52 }
 0x13f   :  { %v396_v28 = vadd.f32 %v3873_v48, %v374_v53  ;;  %v397_v33 = vadd.f32 %v3873_v48, %v375_v55  ;;  %v398_v59 = vadd.f32 %v3873_v48, %v376_v46  ;;  %v395_v60 = vadd.f32 %v3873_v48, %v373_v56 }
 0x140   :  { %v393_v61 = vadd.f32 %v3873_v48, %v371_v35  ;;  %v394_v47 = vadd.f32 %v3873_v48, %v372_v37  ;;  %v391_v62 = vadd.f32 %v3873_v48, %v369_v41  ;;  %v392_v63 = vadd.f32 %v3873_v48, %v370_v58 }
 0x141   :  { %vm413_vm5 = vcmp.ge.f32.partialorder %v397_v33, 0.0  ;;  %vm414_vm6 = vcmp.ge.f32.partialorder %v398_v59, 0.0  ;;  %v429_v1 = vmul.f32 0.01, %v397_v33  ;;  %v430_v2 = vmul.f32 0.01, %v398_v59 }
 0x142   :  { %vm411_vm7 = vcmp.ge.f32.partialorder %v395_v60, 0.0  ;;  %vm412_vm8 = vcmp.ge.f32.partialorder %v396_v28, 0.0  ;;  %v427_v3 = vmul.f32 0.01, %v395_v60  ;;  %v428_v43 = vmul.f32 0.01, %v396_v28 }
 0x143   :  { %v445_v9 = vsel %vm413_vm5, %v397_v33, %v429_v1  ;;  %v446_v14 = vsel %vm414_vm6, %v398_v59, %v430_v2  ;;  %vm409_vm9 = vcmp.ge.f32.partialorder %v393_v61, 0.0  ;;  %vm410_vm10 = vcmp.ge.f32.partialorder %v394_v47, 0.0 }
 0x144   :  { %v454_v11 = vpack.c.bf16 %v446_v14, %v445_v9  ;;  %v443_v51 = vsel %vm411_vm7, %v395_v60, %v427_v3  ;;  %v444_v4 = vsel %vm412_vm8, %v396_v28, %v428_v43  ;;  %v425_v13 = vmul.f32 0.01, %v393_v61 }
 0x145   :  { %v453_v12 = vpack.c.bf16 %v444_v4, %v443_v51  ;;  %v426_v20 = vmul.f32 0.01, %v394_v47  ;;  %vm407_vm11 = vcmp.ge.f32.partialorder %v391_v62, 0.0  ;;  %vm408_vm12 = vcmp.ge.f32.partialorder %v392_v63, 0.0 }
 0x146   :  { %3130 = vmatprep.subr.bf16.mxu1 %v454_v11  ;;  %v441_v21 = vsel %vm409_vm9, %v393_v61, %v425_v13  ;;  %v423_v22 = vmul.f32 0.01, %v391_v62  ;;  %v424_v27 = vmul.f32 0.01, %v392_v63  ;;  %v345_v32 = vmul.f32 %v3855_v34, %v3799_v19  ;;  %v3934_v61 = vpop.permute.xlu1 %573 }
 0x147   :  { %3131 = vmatpush3.bf16.msra.mxu1 %v454_v11  ;;  %v442_v45 = vsel %vm410_vm10, %v394_v47, %v426_v20  ;;  %v346_v49 = vmul.f32 %v3855_v34, %v3805_v24  ;;  %v343_v29 = vmul.f32 %v3855_v34, %v3788_v15  ;;  %v344_v50 = vmul.f32 %v3855_v34, %v3792_v16 }
 0x148   :  { %3132 = vmatprep.subr.bf16.mxu1 %v453_v12  ;;  %v452_v52 = vpack.c.bf16 %v442_v45, %v441_v21  ;;  %v439_v19 = vsel %vm407_vm11, %v391_v62, %v423_v22  ;;  %v440_v53 = vsel %vm408_vm12, %v392_v63, %v424_v27  ;;  %v367_v55 = vmul.f32 %v3860_v36, %v345_v32 }
 0x149   :  { %v451_v46 = vpack.c.bf16 %v440_v53, %v439_v19  ;;  %v368_v56 = vmul.f32 %v3860_v36, %v346_v49  ;;  %v365_v35 = vmul.f32 %v3860_v36, %v343_v29  ;;  %v366_v24 = vmul.f32 %v3860_v36, %v344_v50  ;;  %v3366_v53 = vld [vmem:[%s4318_s5 + $0x8] sm:$0xff]  }
 0x14a   :  { %v389_v15 = vadd.f32 %v3873_v48, %v367_v55  ;;  %v341_v16 = vmul.f32 %v3855_v34, %v3779_v7  ;;  %v342_v37 = vmul.f32 %v3855_v34, %v3782_v8  ;;  %v339_v41 = vmul.f32 %v3855_v34, %v3774_v5  ;;  %v3936_v5 = vpop.permute.xlu0 %570  ;;  %v3942_v51 = vpop.permute.xlu1 %579  ;;  %v3367_v55 = vld [vmem:[%s4318_s5] sm:$0xff]   ;;  %3210 = vmatprep.subr.bf16.mxu0 %v3366_v53 }
 0x14b   :  { %3133 = vmatpush3.bf16.msra.mxu1 %v453_v12  ;;  %v390_v58 = vadd.f32 %v3873_v48, %v368_v56  ;;  %v387_v28 = vadd.f32 %v3873_v48, %v365_v35  ;;  %v388_v33 = vadd.f32 %v3873_v48, %v366_v24  ;;  %v340_v59 = vmul.f32 %v3855_v34, %v3776_v6 }
 0x14c   :  { %3134 = vmatprep.subr.bf16.mxu1 %v452_v52  ;;  %vm405_vm13 = vcmp.ge.f32.partialorder %v389_v15, 0.0  ;;  %v421_v60 = vmul.f32 0.01, %v389_v15  ;;  %v363_v7 = vmul.f32 %v3860_v36, %v341_v16  ;;  %v364_v8 = vmul.f32 %v3860_v36, %v342_v37  ;;  %3211 = vmatpush3.bf16.msra.mxu0 %v3366_v53 }
 0x14d   :  { %vm406_vm14 = vcmp.ge.f32.partialorder %v390_v58, 0.0  ;;  %v422_v47 = vmul.f32 0.01, %v390_v58  ;;  %vm403_vm15 = vcmp.ge.f32.partialorder %v387_v28, 0.0  ;;  %vm404_vm0 = vcmp.ge.f32.partialorder %v388_v33, 0.0  ;;  %3212 = vmatprep.subr.bf16.mxu0 %v3367_v55 }
 0x14e   :  { %v437_v62 = vsel %vm405_vm13, %v389_v15, %v421_v60  ;;  %v419_v63 = vmul.f32 0.01, %v387_v28  ;;  %v420_v1 = vmul.f32 0.01, %v388_v33  ;;  %v385_v6 = vadd.f32 %v3873_v48, %v363_v7  ;;  %v3944_v4 = vpop.permute.xlu0 %576  ;;  %v3948_v49 = vpop.permute.xlu1 %585 }
 0x14f   :  { %3135 = vmatpush3.bf16.msra.mxu1 %v452_v52  ;;  %v438_v34 = vsel %vm406_vm14, %v390_v58, %v422_v47  ;;  %v386_v2 = vadd.f32 %v3873_v48, %v364_v8  ;;  %v361_v3 = vmul.f32 %v3860_v36, %v339_v41  ;;  %v362_v43 = vmul.f32 %v3860_v36, %v340_v59  ;;  %v4047_v8 = vld [vmem:[%s4318_s5 + $0x18] sm:$0xff]  }
 0x150   :  { %3136 = vmatprep.subr.bf16.mxu1 %v451_v46  ;;  %v450_v9 = vpack.c.bf16 %v438_v34, %v437_v62  ;;  %v435_v14 = vsel %vm403_vm15, %v387_v28, %v419_v63  ;;  %v436_v11 = vsel %vm404_vm0, %v388_v33, %v420_v1  ;;  %v417_v13 = vmul.f32 0.01, %v385_v6  ;;  %3213 = vmatpush3.bf16.msra.mxu0 %v3367_v55 }
 0x151   :  { %v418_v12 = vmul.f32 0.01, %v386_v2  ;;  %v383_v20 = vadd.f32 %v3873_v48, %v361_v3  ;;  %v384_v21 = vadd.f32 %v3873_v48, %v362_v43  ;;  %vm401_vm2 = vcmp.ge.f32.partialorder %v385_v6, 0.0  ;;  %3218 = vmatprep.subr.bf16.mxu0 %v4047_v8 }
 0x152   :  { %vm402_vm3 = vcmp.ge.f32.partialorder %v386_v2, 0.0  ;;  %v449_v22 = vpack.c.bf16 %v436_v11, %v435_v14  ;;  %v433_v36 = vsel %vm401_vm2, %v385_v6, %v417_v13  ;;  %v3950_v29 = vpop.permute.xlu0 %582  ;;  %vm715_vm6 = vcmp.eq.s32.totalorder %v3753_v44, %v3839_v10 }
 0x153   :  { %3137 = vmatpush3.bf16.msra.mxu1 %v451_v46  ;;  %v434_v27 = vsel %vm402_vm3, %v386_v2, %v418_v12  ;;  %v415_v32 = vmul.f32 0.01, %v383_v20  ;;  %v416_v45 = vmul.f32 0.01, %v384_v21  ;;  %vm399_vm4 = vcmp.ge.f32.partialorder %v383_v20, 0.0  ;;  %v3958_v46 = vpop.permute.xlu1 %591 }
 0x154   :  { %3138 = vmatprep.subr.bf16.mxu1 %v450_v9  ;;  %vm400_vm5 = vcmp.ge.f32.partialorder %v384_v21, 0.0  ;;  %v448_v50 = vpack.c.bf16 %v434_v27, %v433_v36  ;;  %vm716_vm7 = vcmp.eq.s32.totalorder %v3753_v44, %v3841_v18  ;;  %vm718_vm8 = vcmp.eq.s32.totalorder %v3753_v44, %v3843_v25  ;;  %v3369_v36 = vld [vmem:[%s4318_s5 + $0x10] sm:$0xff]  }
 0x155   :  { %v431_v52 = vsel %vm399_vm4, %v383_v20, %v415_v32  ;;  %v432_v48 = vsel %vm400_vm5, %v384_v21, %v416_v45  ;;  %vm717_vm9 = vcmp.eq.s32.totalorder %v3753_v44, %v3845_v26  ;;  %vm2857_vm10 = vmpackc.low %vm716_vm7, %vm715_vm6  ;;  %vm720_vm12 = vcmp.eq.s32.totalorder %v3753_v44, %v3847_v17 }
 0x156   :  { %v447_v19 = vpack.c.bf16 %v432_v48, %v431_v52  ;;  %v3960_v56 = vpop.permute.xlu0 %588  ;;  %vm2859_vm11 = vmpackc.low %vm718_vm8, %vm717_vm9  ;;  %vm719_vm13 = vcmp.eq.s32.totalorder %v3753_v44, %v3849_v30  ;;  %vm722_vm14 = vcmp.eq.s32.totalorder %v3753_v44, %v3851_v31  ;;  %vm721_vm15 = vcmp.eq.s32.totalorder %v3753_v44, %v3853_v23 }
 0x157   :  { %3139 = vmatpush3.bf16.msra.mxu1 %v450_v9  ;;  %v598_v35 = vpop.permute.xlu1 %597  ;;  %vm2861_vm0 = vmpackc.low %vm720_vm12, %vm719_vm13  ;;  %vm724_vm3 = vcmp.eq.s32.totalorder %v3753_v44, %v3863_v38  ;;  %vm723_vm4 = vcmp.eq.s32.totalorder %v3753_v44, %v3865_v39  ;;  %vm726_vm5 = vcmp.eq.s32.totalorder %v3753_v44, %v3897_v0  ;;  %vm725_vm6 = vcmp.eq.s32.totalorder %v3753_v44, %v3899_v54 }
 0x158   :  { %3140 = vmatprep.subr.bf16.mxu1 %v449_v22  ;;  %vm2863_vm2 = vmpackc.low %vm722_vm14, %vm721_vm15  ;;  %vm728_vm9 = vcmp.eq.s32.totalorder %v3753_v44, %v3903_v40  ;;  %vm729_vm12 = vcmp.eq.s32.totalorder %v3753_v44, %v3936_v5  ;;  %vm732_vm15 = vcmp.eq.s32.totalorder %v3753_v44, %v3942_v51 }
 0x159   :  { %vm2865_vm7 = vmpackc.low %vm724_vm3, %vm723_vm4  ;;  %vm733_vm3 = vcmp.eq.s32.totalorder %v3753_v44, %v3950_v29 }
 0x15a   :  { %v595_v24 = vpop.permute.xlu0 %594  ;;  %vm2867_vm8 = vmpackc.low %vm726_vm5, %vm725_vm6  ;;  %vm736_vm6 = vcmp.eq.s32.totalorder %v3753_v44, %v3958_v46 }
 0x15b   :  { %3141 = vmatpush3.bf16.msra.mxu1 %v449_v22  ;;  %v604_v10 = vpop.permute.xlu1 %603 }
 0x15c   :  { %3142 = vmatprep.subr.bf16.mxu1 %v448_v50 }
 0x15e   :  { %v601_v18 = vpop.permute.xlu0 %600 }
 0x15f   :  { %3143 = vmatpush3.bf16.msra.mxu1 %v448_v50  ;;  %v610_v25 = vpop.permute.xlu1 %609  ;;  %v3371_v50 = vld [vmem:[%s4318_s5 + $0x20] sm:$0xff]  }
 0x160   :  { %3144 = vmatprep.subr.bf16.mxu1 %v447_v19 }
 0x162   :  { %v607_v26 = vpop.permute.xlu0 %606 }
 0x163   :  { %3145 = vmatpush3.bf16.msra.mxu1 %v447_v19  ;;  %v616_v17 = vpop.permute.xlu1 %615  ;;  %v3372_v19 = vld [vmem:[%s4318_s5 + $0x38] sm:$0xff]  }
 0x166   :  { %3147 = vmatmul.mubr.msk.bf16.vlgmr.msra.gmra.mxu1 %vm2857_vm10, %v3431_v57  ;;  %v613_v30 = vpop.permute.xlu0 %612  ;;  %vm727_vm10 = vcmp.eq.s32.totalorder %v3753_v44, %v3905_v42 }
 0x167   :  { %3150 = vmatprep.mubr.msk.bf16.mxu1 %vm2859_vm11, %v3431_v57  ;;  %vm730_vm11 = vcmp.eq.s32.totalorder %v3753_v44, %v3934_v61  ;;  %vm2869_vm13 = vmpackc.low %vm728_vm9, %vm727_vm10  ;;  %v622_v31 = vpop.permute.xlu1 %621  ;;  %vm737_vm9 = vcmp.eq.s32.totalorder %v3753_v44, %v595_v24 }
 0x168   :  { %vm2871_vm14 = vmpackc.low %vm730_vm11, %vm729_vm12  ;;  %vm740_vm12 = vcmp.eq.s32.totalorder %v3753_v44, %v604_v10 }
 0x16a   :  { %v619_v23 = vpop.permute.xlu0 %618 }
 0x16b   :  { %v628_v38 = vpop.permute.xlu1 %627 }
 0x16e   :  { %3151 = vmatmul.mubr.msk.bf16.gmra.mxu1 %vm2861_vm0, %v3431_v57  ;;  %vm731_vm0 = vcmp.eq.s32.totalorder %v3753_v44, %v3944_v4  ;;  %v625_v39 = vpop.permute.xlu0 %624 }
 0x16f   :  { %3154 = vmatprep.mubr.msk.bf16.mxu1 %vm2863_vm2, %v3431_v57  ;;  %vm734_vm2 = vcmp.eq.s32.totalorder %v3753_v44, %v3948_v49  ;;  %vm2873_vm4 = vmpackc.low %vm732_vm15, %vm731_vm0  ;;  %v634_v0 = vpop.permute.xlu1 %633  ;;  %vm741_vm15 = vcmp.eq.s32.totalorder %v3753_v44, %v607_v26 }
 0x170   :  { %vm2875_vm5 = vmpackc.low %vm734_vm2, %vm733_vm3  ;;  %vm744_vm3 = vcmp.eq.s32.totalorder %v3753_v44, %v616_v17 }
 0x172   :  { %v631_v54 = vpop.permute.xlu0 %630 }
 0x173   :  { %v640_v40 = vpop.permute.xlu1 %639 }
 0x176   :  { %3155 = vmatmul.mubr.msk.bf16.gmra.mxu1 %vm2865_vm7, %v3431_v57  ;;  %vm735_vm7 = vcmp.eq.s32.totalorder %v3753_v44, %v3960_v56  ;;  %v637_v42 = vpop.permute.xlu0 %636 }
 0x177   :  { %3158 = vmatprep.mubr.msk.bf16.mxu1 %vm2867_vm8, %v3431_v57  ;;  %vm738_vm8 = vcmp.eq.s32.totalorder %v3753_v44, %v598_v35  ;;  %vm2877_vm10 = vmpackc.low %vm736_vm6, %vm735_vm7  ;;  %v646_v15 = vpop.permute.xlu1 %645  ;;  %vm745_vm6 = vcmp.eq.s32.totalorder %v3753_v44, %v619_v23  ;;  %v3373_v35 = vld [vmem:[%s4318_s5 + $0x30] sm:$0xff]  }
 0x178   :  { %vm2879_vm11 = vmpackc.low %vm738_vm8, %vm737_vm9  ;;  %vm748_vm9 = vcmp.eq.s32.totalorder %v3753_v44, %v628_v38 }
 0x17a   :  { %v643_v16 = vpop.permute.xlu0 %642 }
 0x17b   :  { %v652_v37 = vpop.permute.xlu1 %651 }
 0x17e   :  { %3159 = vmatmul.mubr.msk.bf16.gmra.mxu1 %vm2869_vm13, %v3431_v57  ;;  %vm739_vm13 = vcmp.eq.s32.totalorder %v3753_v44, %v601_v18  ;;  %v649_v41 = vpop.permute.xlu0 %648  ;;  %v3374_v18 = vld [vmem:[%s4318_s5 + $0x48] sm:$0xff]  }
 0x17f   :  { %3162 = vmatprep.mubr.msk.bf16.mxu1 %vm2871_vm14, %v3431_v57  ;;  %vm742_vm14 = vcmp.eq.s32.totalorder %v3753_v44, %v610_v25  ;;  %vm2881_vm0 = vmpackc.low %vm740_vm12, %vm739_vm13  ;;  %v658_v58 = vpop.permute.xlu1 %657  ;;  %vm749_vm12 = vcmp.eq.s32.totalorder %v3753_v44, %v631_v54 }
 0x180   :  { %vm2883_vm2 = vmpackc.low %vm742_vm14, %vm741_vm15  ;;  %vm752_vm15 = vcmp.eq.s32.totalorder %v3753_v44, %v640_v40 }
 0x182   :  { %v655_v28 = vpop.permute.xlu0 %654 }
 0x183   :  { %v664_v33 = vpop.permute.xlu1 %663 }
 0x186   :  { %3163 = vmatmul.mubr.msk.bf16.gmra.mxu1 %vm2873_vm4, %v3431_v57  ;;  %vm743_vm4 = vcmp.eq.s32.totalorder %v3753_v44, %v613_v30  ;;  %v661_v59 = vpop.permute.xlu0 %660 }
 0x187   :  { %3166 = vmatprep.mubr.msk.bf16.mxu1 %vm2875_vm5, %v3431_v57  ;;  %vm746_vm5 = vcmp.eq.s32.totalorder %v3753_v44, %v622_v31  ;;  %vm2885_vm7 = vmpackc.low %vm744_vm3, %vm743_vm4  ;;  %vm753_vm3 = vcmp.eq.s32.totalorder %v3753_v44, %v643_v16  ;;  %v670_v60 = vpop.permute.xlu1 %669  ;;  %v3375_v31 = vld [vmem:[%s4318_s5 + $0x40] sm:$0xff]  }
 0x188   :  { %vm2887_vm8 = vmpackc.low %vm746_vm5, %vm745_vm6  ;;  %vm756_vm6 = vcmp.eq.s32.totalorder %v3753_v44, %v652_v37 }
 0x18a   :  { %v667_v7 = vpop.permute.xlu0 %666 }
 0x18b   :  { %v676_v61 = vpop.permute.xlu1 %675 }
 0x18e   :  { %3167 = vmatmul.mubr.msk.bf16.gmra.mxu1 %vm2877_vm10, %v3431_v57  ;;  %vm747_vm10 = vcmp.eq.s32.totalorder %v3753_v44, %v625_v39  ;;  %v673_v5 = vpop.permute.xlu0 %672  ;;  %v3376_v39 = vld [vmem:[%s4318_s5 + $0x58] sm:$0xff]  }
 0x18f   :  { %3170 = vmatprep.mubr.msk.bf16.mxu1 %vm2879_vm11, %v3431_v57  ;;  %vm750_vm11 = vcmp.eq.s32.totalorder %v3753_v44, %v634_v0  ;;  %vm2889_vm13 = vmpackc.low %vm748_vm9, %vm747_vm10  ;;  %vm757_vm9 = vcmp.eq.s32.totalorder %v3753_v44, %v655_v28  ;;  %v682_v47 = vpop.permute.xlu1 %681 }
 0x190   :  { %vm2891_vm14 = vmpackc.low %vm750_vm11, %vm749_vm12  ;;  %vm760_vm12 = vcmp.eq.s32.totalorder %v3753_v44, %v664_v33 }
 0x192   :  { %v679_v62 = vpop.permute.xlu0 %678 }
 0x193   :  { %v688_v63 = vpop.permute.xlu1 %687 }
 0x196   :  { %3171 = vmatmul.mubr.msk.bf16.gmra.mxu1 %vm2881_vm0, %v3431_v57  ;;  %vm751_vm0 = vcmp.eq.s32.totalorder %v3753_v44, %v637_v42  ;;  %v685_v1 = vpop.permute.xlu0 %684 }
 0x197   :  { %3174 = vmatprep.mubr.msk.bf16.mxu1 %vm2883_vm2, %v3431_v57  ;;  %vm754_vm2 = vcmp.eq.s32.totalorder %v3753_v44, %v646_v15  ;;  %vm2893_vm4 = vmpackc.low %vm752_vm15, %vm751_vm0  ;;  %vm761_vm15 = vcmp.eq.s32.totalorder %v3753_v44, %v667_v7  ;;  %v694_v6 = vpop.permute.xlu1 %693  ;;  %v3377_v15 = vld [vmem:[%s4318_s5 + $0x50] sm:$0xff]  }
 0x198   :  { %vm2895_vm5 = vmpackc.low %vm754_vm2, %vm753_vm3  ;;  %vm764_vm3 = vcmp.eq.s32.totalorder %v3753_v44, %v676_v61  ;;  %v3380_v61 = vld [vmem:[%s4318_s5 + $0x78] sm:$0xff]  }
 0x19a   :  { %v691_v34 = vpop.permute.xlu0 %690 }
 0x19b   :  { %v700_v2 = vpop.permute.xlu1 %699 }
 0x19e   :  { %3175 = vmatmul.mubr.msk.bf16.gmra.mxu1 %vm2885_vm7, %v3431_v57  ;;  %vm755_vm7 = vcmp.eq.s32.totalorder %v3753_v44, %v649_v41  ;;  %v697_v3 = vpop.permute.xlu0 %696  ;;  %v3378_v41 = vld [vmem:[%s4318_s5 + $0x68] sm:$0xff]  }
 0x19f   :  { %3178 = vmatprep.mubr.msk.bf16.mxu1 %vm2887_vm8, %v3431_v57  ;;  %vm758_vm8 = vcmp.eq.s32.totalorder %v3753_v44, %v658_v58  ;;  %vm2897_vm10 = vmpackc.low %vm756_vm6, %vm755_vm7  ;;  %vm765_vm6 = vcmp.eq.s32.totalorder %v3753_v44, %v679_v62  ;;  %v706_v43 = vpop.permute.xlu1 %705 }
 0x1a0   :  { %vm2899_vm11 = vmpackc.low %vm758_vm8, %vm757_vm9  ;;  %vm768_vm9 = vcmp.eq.s32.totalorder %v3753_v44, %v688_v63 }
 0x1a2   :  { %v703_v9 = vpop.permute.xlu0 %702 }
 0x1a3   :  { %v712_v14 = vpop.permute.xlu1 %711 }
 0x1a6   :  { %3179 = vmatmul.mubr.msk.bf16.gmra.mxu1 %vm2889_vm13, %v3431_v57  ;;  %vm759_vm13 = vcmp.eq.s32.totalorder %v3753_v44, %v661_v59  ;;  %v709_v11 = vpop.permute.xlu0 %708 }
 0x1a7   :  { %3182 = vmatprep.mubr.msk.bf16.mxu1 %vm2891_vm14, %v3431_v57  ;;  %vm762_vm14 = vcmp.eq.s32.totalorder %v3753_v44, %v670_v60  ;;  %vm2901_vm0 = vmpackc.low %vm760_vm12, %vm759_vm13  ;;  %vm769_vm12 = vcmp.eq.s32.totalorder %v3753_v44, %v691_v34  ;;  %v3379_v60 = vld [vmem:[%s4318_s5 + $0x60] sm:$0xff]  }
 0x1a8   :  { %vm2903_vm2 = vmpackc.low %vm762_vm14, %vm761_vm15  ;;  %vm772_vm15 = vcmp.eq.s32.totalorder %v3753_v44, %v700_v2  ;;  %v3382_v2 = vld [vmem:[%s4318_s5 + $0x88] sm:$0xff]  }
 0x1ae   :  { %3183 = vmatmul.mubr.msk.bf16.gmra.mxu1 %vm2893_vm4, %v3431_v57  ;;  %vm763_vm4 = vcmp.eq.s32.totalorder %v3753_v44, %v673_v5 }
 0x1af   :  { %3186 = vmatprep.mubr.msk.bf16.mxu1 %vm2895_vm5, %v3431_v57  ;;  %vm766_vm5 = vcmp.eq.s32.totalorder %v3753_v44, %v682_v47  ;;  %vm2905_vm7 = vmpackc.low %vm764_vm3, %vm763_vm4  ;;  %vm773_vm3 = vcmp.eq.s32.totalorder %v3753_v44, %v703_v9 }
 0x1b0   :  { %vm2907_vm8 = vmpackc.low %vm766_vm5, %vm765_vm6  ;;  %vm776_vm6 = vcmp.eq.s32.totalorder %v3753_v44, %v712_v14 }
 0x1b6   :  { %3187 = vmatmul.mubr.msk.bf16.gmra.mxu1 %vm2897_vm10, %v3431_v57  ;;  %vm767_vm10 = vcmp.eq.s32.totalorder %v3753_v44, %v685_v1  ;;  %v3381_v1 = vld [vmem:[%s4318_s5 + $0x70] sm:$0xff]  }
 0x1b7   :  { %3190 = vmatprep.mubr.msk.bf16.mxu1 %vm2899_vm11, %v3431_v57  ;;  %vm770_vm11 = vcmp.eq.s32.totalorder %v3753_v44, %v694_v6  ;;  %vm2909_vm13 = vmpackc.low %vm768_vm9, %vm767_vm10  ;;  %vm2394_vm9 = vcmask 523264  }
 0x1b8   :  { %vm2911_vm14 = vmpackc.low %vm770_vm11, %vm769_vm12 }
 0x1be   :  { %3191 = vmatmul.mubr.msk.bf16.gmra.mxu1 %vm2901_vm0, %v3431_v57  ;;  %vm771_vm0 = vcmp.eq.s32.totalorder %v3753_v44, %v697_v3 }
 0x1bf   :  { %3194 = vmatprep.mubr.msk.bf16.mxu1 %vm2903_vm2, %v3431_v57  ;;  %vm774_vm2 = vcmp.eq.s32.totalorder %v3753_v44, %v706_v43  ;;  %vm2913_vm4 = vmpackc.low %vm772_vm15, %vm771_vm0 }
 0x1c0   :  { %vm2915_vm5 = vmpackc.low %vm774_vm2, %vm773_vm3 }
 0x1c6   :  { %3195 = vmatmul.mubr.msk.bf16.gmra.mxu1 %vm2905_vm7, %v3431_v57  ;;  %vm775_vm7 = vcmp.eq.s32.totalorder %v3753_v44, %v709_v11  ;;  %v3383_v11 = vld [vmem:[%s4318_s5 + $0x80] sm:$0xff]  }
 0x1c7   :  { %3198 = vmatprep.mubr.msk.bf16.mxu1 %vm2907_vm8, %v3431_v57  ;;  %vm2917_vm8 = vmpackc.low %vm776_vm6, %vm775_vm7 }
 0x1ce   :  { %3199 = vmatmul.mubr.msk.bf16.gmra.mxu1 %vm2909_vm13, %v3431_v57 }
 0x1cf   :  { %3202 = vmatprep.mubr.msk.bf16.mxu1 %vm2911_vm14, %v3431_v57 }
 0x1d6   :  { %3203 = vmatmul.mubr.msk.bf16.gmra.mxu1 %vm2913_vm4, %v3431_v57 }
 0x1d7   :  { %3206 = vmatprep.mubr.msk.bf16.mxu1 %vm2915_vm5, %v3431_v57 }
 0x1de   :  { %3207 = vmatmul.mubr.msk.bf16.gmra.mxu1 %vm2917_vm8, %v3431_v57  ;;  %v3370_v57 = vld [vmem:[%s4318_s5 + $0x28] sm:$0xff]  }
 0x226   :  { %v3148_v51 = vpop.f32.mrf.mxu1 }
 0x228   :  { %v971_v4 = vpop.f32.mrf.mxu1 }
 0x22a   :  { %v3149_v13 = vpop.f32.mrf.mxu1 }
 0x22b   :  { %v1227_v21 = vpack.c.bf16 %v3149_v13, %v3148_v51  ;;  %v3384_v13 = vld [vmem:[%s4318_s5 + $0x98] sm:$0xff]  }
 0x22c   :  { %v974_v12 = vpop.f32.mrf.mxu1 }
 0x22d   :  { %v1226_v20 = vpack.c.bf16 %v974_v12, %v971_v4 }
 0x22e   :  { %v3152_v22 = vpop.f32.mrf.mxu1 }
 0x22f   :  { %3214 = vmatprep.mubr.msk.bf16.mxu0 %vm228_vm1, %v1226_v20 }
 0x230   :  { %v987_v27 = vpop.f32.mrf.mxu1  ;;  %3215 = vmatmul.mubr.msk.bf16.vlgmr.msra.gmra.mxu0 %vm228_vm1, %v1227_v21 }
 0x231   :  { %3219 = vmatpush3.bf16.msra.mxu0 %v4047_v8 }
 0x232   :  { %v3153_v44 = vpop.f32.mrf.mxu1  ;;  %3220 = vmatprep.subr.bf16.mxu0 %v3369_v36 }
 0x233   :  { %v1229_v49 = vpack.c.bf16 %v3153_v44, %v3152_v22 }
 0x234   :  { %v990_v32 = vpop.f32.mrf.mxu1 }
 0x235   :  { %v1228_v45 = vpack.c.bf16 %v990_v32, %v987_v27  ;;  %3221 = vmatpush3.bf16.msra.mxu0 %v3369_v36  ;;  %v3385_v36 = vld [vmem:[%s4318_s5 + $0x90] sm:$0xff]  }
 0x236   :  { %v3156_v29 = vpop.f32.mrf.mxu1  ;;  %3226 = vmatprep.subr.bf16.mxu0 %v3370_v57 }
 0x237   :  { %3222 = vmatprep.mubr.msk.bf16.mxu0 %vm228_vm1, %v1228_v45 }
 0x238   :  { %v1003_v52 = vpop.f32.mrf.mxu1  ;;  %3223 = vmatmul.mubr.msk.bf16.vlgmr.msra.gmra.mxu0 %vm228_vm1, %v1229_v49 }
 0x239   :  { %3227 = vmatpush3.bf16.msra.mxu0 %v3370_v57  ;;  %v3386_v57 = vld [vmem:[%s4318_s5 + $0xa8] sm:$0xff]  }
 0x23a   :  { %v3157_v48 = vpop.f32.mrf.mxu1  ;;  %3228 = vmatprep.subr.bf16.mxu0 %v3371_v50 }
 0x23b   :  { %v1231_v46 = vpack.c.bf16 %v3157_v48, %v3156_v29 }
 0x23c   :  { %v1006_v53 = vpop.f32.mrf.mxu1 }
 0x23d   :  { %v1230_v55 = vpack.c.bf16 %v1006_v53, %v1003_v52  ;;  %3229 = vmatpush3.bf16.msra.mxu0 %v3371_v50  ;;  %v3387_v50 = vld [vmem:[%s4318_s5 + $0xa0] sm:$0xff]  }
 0x23e   :  { %v3160_v56 = vpop.f32.mrf.mxu1  ;;  %3234 = vmatprep.subr.bf16.mxu0 %v3372_v19 }
 0x23f   :  { %3230 = vmatprep.mubr.msk.bf16.mxu0 %vm228_vm1, %v1230_v55 }
 0x240   :  { %v1019_v24 = vpop.f32.mrf.mxu1  ;;  %3231 = vmatmul.mubr.msk.bf16.vlgmr.msra.gmra.mxu0 %vm228_vm1, %v1231_v46 }
 0x241   :  { %3235 = vmatpush3.bf16.msra.mxu0 %v3372_v19  ;;  %v3388_v19 = vld [vmem:[%s4318_s5 + $0xb8] sm:$0xff]  }
 0x242   :  { %v3161_v10 = vpop.f32.mrf.mxu1  ;;  %3236 = vmatprep.subr.bf16.mxu0 %v3373_v35 }
 0x243   :  { %v1233_v17 = vpack.c.bf16 %v3161_v10, %v3160_v56 }
 0x244   :  { %v1022_v25 = vpop.f32.mrf.mxu1 }
 0x245   :  { %v1232_v26 = vpack.c.bf16 %v1022_v25, %v1019_v24  ;;  %3237 = vmatpush3.bf16.msra.mxu0 %v3373_v35  ;;  %v3389_v35 = vld [vmem:[%s4318_s5 + $0xb0] sm:$0xff]  }
 0x246   :  { %v3164_v30 = vpop.f32.mrf.mxu1  ;;  %3242 = vmatprep.subr.bf16.mxu0 %v3374_v18 }
 0x247   :  { %3238 = vmatprep.mubr.msk.bf16.mxu0 %vm228_vm1, %v1232_v26 }
 0x248   :  { %v1035_v23 = vpop.f32.mrf.mxu1  ;;  %3239 = vmatmul.mubr.msk.bf16.vlgmr.msra.gmra.mxu0 %vm228_vm1, %v1233_v17 }
 0x249   :  { %3243 = vmatpush3.bf16.msra.mxu0 %v3374_v18  ;;  %v3390_v18 = vld [vmem:[%s4318_s5 + $0xc8] sm:$0xff]  }
 0x24a   :  { %v3165_v38 = vpop.f32.mrf.mxu1  ;;  %3244 = vmatprep.subr.bf16.mxu0 %v3375_v31 }
 0x24b   :  { %v1235_v40 = vpack.c.bf16 %v3165_v38, %v3164_v30 }
 0x24c   :  { %v1038_v0 = vpop.f32.mrf.mxu1 }
 0x24d   :  { %v1234_v54 = vpack.c.bf16 %v1038_v0, %v1035_v23  ;;  %3245 = vmatpush3.bf16.msra.mxu0 %v3375_v31  ;;  %v3391_v31 = vld [vmem:[%s4318_s5 + $0xc0] sm:$0xff]  }
 0x24e   :  { %v3168_v42 = vpop.f32.mrf.mxu1  ;;  %3250 = vmatprep.subr.bf16.mxu0 %v3376_v39 }
 0x24f   :  { %3246 = vmatprep.mubr.msk.bf16.mxu0 %vm228_vm1, %v1234_v54 }
 0x250   :  { %v1051_v16 = vpop.f32.mrf.mxu1  ;;  %3247 = vmatmul.mubr.msk.bf16.vlgmr.msra.gmra.mxu0 %vm228_vm1, %v1235_v40 }
 0x251   :  { %3251 = vmatpush3.bf16.msra.mxu0 %v3376_v39  ;;  %v3392_v39 = vld [vmem:[%s4318_s5 + $0xd8] sm:$0xff]  }
 0x252   :  { %v3169_v37 = vpop.f32.mrf.mxu1  ;;  %3252 = vmatprep.subr.bf16.mxu0 %v3377_v15 }
 0x253   :  { %v1237_v33 = vpack.c.bf16 %v3169_v37, %v3168_v42 }
 0x254   :  { %v1054_v58 = vpop.f32.mrf.mxu1 }
 0x255   :  { %v1236_v28 = vpack.c.bf16 %v1054_v58, %v1051_v16  ;;  %3253 = vmatpush3.bf16.msra.mxu0 %v3377_v15  ;;  %v3393_v15 = vld [vmem:[%s4318_s5 + $0xd0] sm:$0xff]  }
 0x256   :  { %v3172_v59 = vpop.f32.mrf.mxu1  ;;  %3258 = vmatprep.subr.bf16.mxu0 %v3378_v41 }
 0x257   :  { %3254 = vmatprep.mubr.msk.bf16.mxu0 %vm228_vm1, %v1236_v28 }
 0x258   :  { %v1067_v7 = vpop.f32.mrf.mxu1  ;;  %3255 = vmatmul.mubr.msk.bf16.vlgmr.msra.gmra.mxu0 %vm228_vm1, %v1237_v33 }
 0x259   :  { %3259 = vmatpush3.bf16.msra.mxu0 %v3378_v41  ;;  %v3394_v41 = vld [vmem:[%s4318_s5 + $0xe8] sm:$0xff]  }
 0x25a   :  { %v3173_v8 = vpop.f32.mrf.mxu1  ;;  %3260 = vmatprep.subr.bf16.mxu0 %v3379_v60 }
 0x25b   :  { %v1239_v62 = vpack.c.bf16 %v3173_v8, %v3172_v59 }
 0x25c   :  { %v1070_v5 = vpop.f32.mrf.mxu1 }
 0x25d   :  { %v1238_v47 = vpack.c.bf16 %v1070_v5, %v1067_v7  ;;  %3261 = vmatpush3.bf16.msra.mxu0 %v3379_v60  ;;  %v3395_v60 = vld [vmem:[%s4318_s5 + $0xe0] sm:$0xff]  }
 0x25e   :  { %v3176_v63 = vpop.f32.mrf.mxu1  ;;  %3266 = vmatprep.subr.bf16.mxu0 %v3380_v61 }
 0x25f   :  { %3262 = vmatprep.mubr.msk.bf16.mxu0 %vm228_vm1, %v1238_v47 }
 0x260   :  { %v1083_v6 = vpop.f32.mrf.mxu1  ;;  %3263 = vmatmul.mubr.msk.bf16.vlgmr.msra.gmra.mxu0 %vm228_vm1, %v1239_v62 }
 0x261   :  { %3267 = vmatpush3.bf16.msra.mxu0 %v3380_v61  ;;  %v3396_v61 = vld [vmem:[%s4318_s5 + $0xf8] sm:$0xff]  }
 0x262   :  { %v3177_v34 = vpop.f32.mrf.mxu1  ;;  %3268 = vmatprep.subr.bf16.mxu0 %v3381_v1 }
 0x263   :  { %v1241_v9 = vpack.c.bf16 %v3177_v34, %v3176_v63 }
 0x264   :  { %v1086_v3 = vpop.f32.mrf.mxu1 }
 0x265   :  { %v1240_v43 = vpack.c.bf16 %v1086_v3, %v1083_v6  ;;  %3269 = vmatpush3.bf16.msra.mxu0 %v3381_v1  ;;  %v3397_v1 = vld [vmem:[%s4318_s5 + $0xf0] sm:$0xff]  }
 0x266   :  { %v3180_v14 = vpop.f32.mrf.mxu1  ;;  %3274 = vmatprep.subr.bf16.mxu0 %v3382_v2 }
 0x267   :  { %3270 = vmatprep.mubr.msk.bf16.mxu0 %vm228_vm1, %v1240_v43 }
 0x268   :  { %v1099_v51 = vpop.f32.mrf.mxu1  ;;  %3271 = vmatmul.mubr.msk.bf16.vlgmr.msra.gmra.mxu0 %vm228_vm1, %v1241_v9  ;;  %v3398_v9 = vld [vmem:[%s4321_s8 + $0x18] sm:$0xff]  }
 0x269   :  { %3275 = vmatpush3.bf16.msra.mxu0 %v3382_v2  ;;  %3338 = vmatprep.subr.bf16.mxu1 %v3398_v9 }
 0x26a   :  { %v3181_v4 = vpop.f32.mrf.mxu1  ;;  %3276 = vmatprep.subr.bf16.mxu0 %v3383_v11  ;;  %3339 = vmatpush3.bf16.msra.mxu1 %v3398_v9 }
 0x26b   :  { %v1243_v21 = vpack.c.bf16 %v3181_v4, %v3180_v14  ;;  %v3399_v14 = vld [vmem:[%s4321_s8 + $0x10] sm:$0xff]  }
 0x26c   :  { %v1102_v12 = vpop.f32.mrf.mxu1  ;;  %3340 = vmatprep.subr.bf16.mxu1 %v3399_v14 }
 0x26d   :  { %v1242_v20 = vpack.c.bf16 %v1102_v12, %v1099_v51  ;;  %3277 = vmatpush3.bf16.msra.mxu0 %v3383_v11 }
 0x26e   :  { %v3184_v22 = vpop.f32.mrf.mxu1  ;;  %3282 = vmatprep.subr.bf16.mxu0 %v3384_v13  ;;  %3341 = vmatpush3.bf16.msra.mxu1 %v3399_v14 }
 0x26f   :  { %3278 = vmatprep.mubr.msk.bf16.mxu0 %vm228_vm1, %v1242_v20 }
 0x270   :  { %v1115_v27 = vpop.f32.mrf.mxu1  ;;  %3279 = vmatmul.mubr.msk.bf16.vlgmr.msra.gmra.mxu0 %vm228_vm1, %v1243_v21 }
 0x271   :  { %3283 = vmatpush3.bf16.msra.mxu0 %v3384_v13 }
 0x272   :  { %v3185_v44 = vpop.f32.mrf.mxu1  ;;  %3284 = vmatprep.subr.bf16.mxu0 %v3385_v36 }
 0x273   :  { %v1245_v49 = vpack.c.bf16 %v3185_v44, %v3184_v22 }
 0x274   :  { %v1118_v32 = vpop.f32.mrf.mxu1 }
 0x275   :  { %v1244_v45 = vpack.c.bf16 %v1118_v32, %v1115_v27  ;;  %3285 = vmatpush3.bf16.msra.mxu0 %v3385_v36 }
 0x276   :  { %v3188_v29 = vpop.f32.mrf.mxu1  ;;  %3290 = vmatprep.subr.bf16.mxu0 %v3386_v57 }
 0x277   :  { %3286 = vmatprep.mubr.msk.bf16.mxu0 %vm228_vm1, %v1244_v45 }
 0x278   :  { %v1131_v52 = vpop.f32.mrf.mxu1  ;;  %3287 = vmatmul.mubr.msk.bf16.vlgmr.msra.gmra.mxu0 %vm228_vm1, %v1245_v49 }
 0x279   :  { %3291 = vmatpush3.bf16.msra.mxu0 %v3386_v57 }
 0x27a   :  { %v3189_v48 = vpop.f32.mrf.mxu1  ;;  %3292 = vmatprep.subr.bf16.mxu0 %v3387_v50 }
 0x27b   :  { %v1247_v46 = vpack.c.bf16 %v3189_v48, %v3188_v29 }
 0x27c   :  { %v1134_v53 = vpop.f32.mrf.mxu1 }
 0x27d   :  { %v1246_v55 = vpack.c.bf16 %v1134_v53, %v1131_v52  ;;  %3293 = vmatpush3.bf16.msra.mxu0 %v3387_v50 }
 0x27e   :  { %v3192_v56 = vpop.f32.mrf.mxu1  ;;  %3298 = vmatprep.subr.bf16.mxu0 %v3388_v19 }
 0x27f   :  { %3294 = vmatprep.mubr.msk.bf16.mxu0 %vm228_vm1, %v1246_v55 }
 0x280   :  { %v1147_v24 = vpop.f32.mrf.mxu1  ;;  %3295 = vmatmul.mubr.msk.bf16.vlgmr.msra.gmra.mxu0 %vm228_vm1, %v1247_v46 }
 0x281   :  { %3299 = vmatpush3.bf16.msra.mxu0 %v3388_v19 }
 0x282   :  { %v3193_v10 = vpop.f32.mrf.mxu1  ;;  %3300 = vmatprep.subr.bf16.mxu0 %v3389_v35 }
 0x283   :  { %v1249_v17 = vpack.c.bf16 %v3193_v10, %v3192_v56 }
 0x284   :  { %v1150_v25 = vpop.f32.mrf.mxu1 }
 0x285   :  { %v1248_v26 = vpack.c.bf16 %v1150_v25, %v1147_v24  ;;  %3301 = vmatpush3.bf16.msra.mxu0 %v3389_v35 }
 0x286   :  { %v3196_v30 = vpop.f32.mrf.mxu1  ;;  %3306 = vmatprep.subr.bf16.mxu0 %v3390_v18 }
 0x287   :  { %3302 = vmatprep.mubr.msk.bf16.mxu0 %vm228_vm1, %v1248_v26 }
 0x288   :  { %v1163_v23 = vpop.f32.mrf.mxu1  ;;  %3303 = vmatmul.mubr.msk.bf16.vlgmr.msra.gmra.mxu0 %vm228_vm1, %v1249_v17 }
 0x289   :  { %3307 = vmatpush3.bf16.msra.mxu0 %v3390_v18 }
 0x28a   :  { %v3197_v38 = vpop.f32.mrf.mxu1  ;;  %3308 = vmatprep.subr.bf16.mxu0 %v3391_v31 }
 0x28b   :  { %v1251_v40 = vpack.c.bf16 %v3197_v38, %v3196_v30 }
 0x28c   :  { %v1166_v0 = vpop.f32.mrf.mxu1 }
 0x28d   :  { %v1250_v54 = vpack.c.bf16 %v1166_v0, %v1163_v23  ;;  %3309 = vmatpush3.bf16.msra.mxu0 %v3391_v31 }
 0x28e   :  { %v3200_v42 = vpop.f32.mrf.mxu1  ;;  %3314 = vmatprep.subr.bf16.mxu0 %v3392_v39 }
 0x28f   :  { %3310 = vmatprep.mubr.msk.bf16.mxu0 %vm228_vm1, %v1250_v54 }
 0x290   :  { %v1179_v16 = vpop.f32.mrf.mxu1  ;;  %3311 = vmatmul.mubr.msk.bf16.vlgmr.msra.gmra.mxu0 %vm228_vm1, %v1251_v40 }
 0x291   :  { %3315 = vmatpush3.bf16.msra.mxu0 %v3392_v39 }
 0x292   :  { %v3201_v37 = vpop.f32.mrf.mxu1  ;;  %3316 = vmatprep.subr.bf16.mxu0 %v3393_v15 }
 0x293   :  { %v1253_v33 = vpack.c.bf16 %v3201_v37, %v3200_v42 }
 0x294   :  { %v1182_v58 = vpop.f32.mrf.mxu1 }
 0x295   :  { %v1252_v28 = vpack.c.bf16 %v1182_v58, %v1179_v16  ;;  %3317 = vmatpush3.bf16.msra.mxu0 %v3393_v15 }
 0x296   :  { %v3204_v59 = vpop.f32.mrf.mxu1  ;;  %3322 = vmatprep.subr.bf16.mxu0 %v3394_v41 }
 0x297   :  { %3318 = vmatprep.mubr.msk.bf16.mxu0 %vm228_vm1, %v1252_v28 }
 0x298   :  { %v1195_v7 = vpop.f32.mrf.mxu1  ;;  %3319 = vmatmul.mubr.msk.bf16.vlgmr.msra.gmra.mxu0 %vm228_vm1, %v1253_v33 }
 0x299   :  { %3323 = vmatpush3.bf16.msra.mxu0 %v3394_v41 }
 0x29a   :  { %v3205_v8 = vpop.f32.mrf.mxu1  ;;  %3324 = vmatprep.subr.bf16.mxu0 %v3395_v60 }
 0x29b   :  { %v1255_v62 = vpack.c.bf16 %v3205_v8, %v3204_v59 }
 0x29c   :  { %v1198_v5 = vpop.f32.mrf.mxu1 }
 0x29d   :  { %v1254_v47 = vpack.c.bf16 %v1198_v5, %v1195_v7  ;;  %3325 = vmatpush3.bf16.msra.mxu0 %v3395_v60 }
 0x29e   :  { %v3208_v63 = vpop.f32.mrf.mxu1  ;;  %3330 = vmatprep.subr.bf16.mxu0 %v3396_v61 }
 0x29f   :  { %3326 = vmatprep.mubr.msk.bf16.mxu0 %vm228_vm1, %v1254_v47 }
 0x2a0   :  { %v1211_v6 = vpop.f32.mrf.mxu1  ;;  %3327 = vmatmul.mubr.msk.bf16.vlgmr.msra.gmra.mxu0 %vm228_vm1, %v1255_v62 }
 0x2a1   :  { %3331 = vmatpush3.bf16.msra.mxu0 %v3396_v61 }
 0x2a2   :  { %v3209_v34 = vpop.f32.mrf.mxu1  ;;  %3332 = vmatprep.subr.bf16.mxu0 %v3397_v1 }
 0x2a3   :  { %v1257_v43 = vpack.c.bf16 %v3209_v34, %v3208_v63 }
 0x2a4   :  { %v1214_v2 = vpop.f32.mrf.mxu1 }
 0x2a5   :  { %v1256_v3 = vpack.c.bf16 %v1214_v2, %v1211_v6  ;;  %3333 = vmatpush3.bf16.msra.mxu0 %v3397_v1 }
 0x2a7   :  { %3334 = vmatprep.mubr.msk.bf16.mxu0 %vm228_vm1, %v1256_v3 }
 0x2a8   :  { %3335 = vmatmul.mubr.msk.bf16.vlgmr.msra.gmra.mxu0 %vm228_vm1, %v1257_v43 }
 0x2f0   :  { %v3216_v11 = vpop.f32.mrf.mxu0 }
 0x2f1   :  { %v2457_v20 = vsel %vm2394_vm9, %v3216_v11, 0.0 }
 0x2f2   :  { %v1374_v51 = vpop.f32.mrf.mxu0 }
 0x2f3   :  { %v2395_v27 = vsel %vm2394_vm9, %v1374_v51, 0.0 }
 0x2f4   :  { %v3217_v4 = vpop.f32.mrf.mxu0 }
 0x2f5   :  { %v2488_v45 = vsel %vm2394_vm9, %v3217_v4, 0.0 }
 0x2f6   :  { %v1377_v13 = vpop.f32.mrf.mxu0 }
 0x2f7   :  { %v2426_v52 = vsel %vm2394_vm9, %v1377_v13, 0.0 }
 0x2f8   :  { %v3224_v12 = vpop.f32.mrf.mxu0 }
 0x2f9   :  { %v2458_v21 = vsel %vm2394_vm9, %v3224_v12, 0.0 }
 0x2fa   :  { %v2459_v22 = vadd.f32 %v2458_v21, %v2457_v20  ;;  %v1441_v36 = vpop.f32.mrf.mxu0 }
 0x2fb   :  { %v2396_v44 = vsel %vm2394_vm9, %v1441_v36, 0.0 }
 0x2fc   :  { %v2397_v57 = vadd.f32 %v2396_v44, %v2395_v27  ;;  %v3225_v32 = vpop.f32.mrf.mxu0 }
 0x2fd   :  { %v2489_v49 = vsel %vm2394_vm9, %v3225_v32, 0.0 }
 0x2fe   :  { %v2490_v29 = vadd.f32 %v2489_v49, %v2488_v45  ;;  %v1444_v50 = vpop.f32.mrf.mxu0  ;;  %v3400_v49 = vld [vmem:[%s4321_s8 + $0x8] sm:$0xff]  }
 0x2ff   :  { %v2427_v48 = vsel %vm2394_vm9, %v1444_v50, 0.0  ;;  %3342 = vmatprep.subr.bf16.mxu1 %v3400_v49 }
 0x300   :  { %v2428_v19 = vadd.f32 %v2427_v48, %v2426_v52  ;;  %v3232_v53 = vpop.f32.mrf.mxu0  ;;  %3343 = vmatpush3.bf16.msra.mxu1 %v3400_v49 }
 0x301   :  { %v2460_v55 = vsel %vm2394_vm9, %v3232_v53, 0.0 }
 0x302   :  { %v2461_v46 = vadd.f32 %v2460_v55, %v2459_v22  ;;  %v1508_v56 = vpop.f32.mrf.mxu0 }
 0x303   :  { %v2398_v35 = vsel %vm2394_vm9, %v1508_v56, 0.0 }
 0x304   :  { %v2399_v24 = vadd.f32 %v2398_v35, %v2397_v57  ;;  %v3233_v10 = vpop.f32.mrf.mxu0 }
 0x305   :  { %v2491_v18 = vsel %vm2394_vm9, %v3233_v10, 0.0 }
 0x306   :  { %v2492_v25 = vadd.f32 %v2491_v18, %v2490_v29  ;;  %v1511_v26 = vpop.f32.mrf.mxu0  ;;  %v3401_v29 = vld [vmem:[%s4321_s8] sm:$0xff]  }
 0x307   :  { %v2429_v17 = vsel %vm2394_vm9, %v1511_v26, 0.0  ;;  %3344 = vmatprep.subr.bf16.mxu1 %v3401_v29 }
 0x308   :  { %v2430_v30 = vadd.f32 %v2429_v17, %v2428_v19  ;;  %v3240_v31 = vpop.f32.mrf.mxu0  ;;  %3345 = vmatpush3.bf16.msra.mxu1 %v3401_v29 }
 0x309   :  { %v2462_v23 = vsel %vm2394_vm9, %v3240_v31, 0.0 }
 0x30a   :  { %v2463_v38 = vadd.f32 %v2462_v23, %v2461_v46  ;;  %v1575_v39 = vpop.f32.mrf.mxu0 }
 0x30b   :  { %v2400_v0 = vsel %vm2394_vm9, %v1575_v39, 0.0 }
 0x30c   :  { %v2401_v54 = vadd.f32 %v2400_v0, %v2399_v24  ;;  %v3241_v40 = vpop.f32.mrf.mxu0 }
 0x30d   :  { %v2493_v42 = vsel %vm2394_vm9, %v3241_v40, 0.0 }
 0x30e   :  { %v2494_v15 = vadd.f32 %v2493_v42, %v2492_v25  ;;  %v1578_v16 = vpop.f32.mrf.mxu0 }
 0x30f   :  { %v2431_v37 = vsel %vm2394_vm9, %v1578_v16, 0.0 }
 0x310   :  { %v2432_v41 = vadd.f32 %v2431_v37, %v2430_v30  ;;  %v3248_v58 = vpop.f32.mrf.mxu0 }
 0x311   :  { %v2464_v28 = vsel %vm2394_vm9, %v3248_v58, 0.0 }
 0x312   :  { %v2465_v33 = vadd.f32 %v2464_v28, %v2463_v38  ;;  %v1642_v59 = vpop.f32.mrf.mxu0 }
 0x313   :  { %v2402_v60 = vsel %vm2394_vm9, %v1642_v59, 0.0 }
 0x314   :  { %v2403_v7 = vadd.f32 %v2402_v60, %v2401_v54  ;;  %v3249_v8 = vpop.f32.mrf.mxu0 }
 0x315   :  { %v2495_v61 = vsel %vm2394_vm9, %v3249_v8, 0.0 }
 0x316   :  { %v2496_v5 = vadd.f32 %v2495_v61, %v2494_v15  ;;  %v1645_v47 = vpop.f32.mrf.mxu0 }
 0x317   :  { %v2433_v62 = vsel %vm2394_vm9, %v1645_v47, 0.0 }
 0x318   :  { %v2434_v63 = vadd.f32 %v2433_v62, %v2432_v41  ;;  %v3256_v1 = vpop.f32.mrf.mxu0 }
 0x319   :  { %v2466_v6 = vsel %vm2394_vm9, %v3256_v1, 0.0 }
 0x31a   :  { %v2467_v34 = vadd.f32 %v2466_v6, %v2465_v33  ;;  %v1709_v2 = vpop.f32.mrf.mxu0 }
 0x31b   :  { %v2404_v3 = vsel %vm2394_vm9, %v1709_v2, 0.0 }
 0x31c   :  { %v2405_v43 = vadd.f32 %v2404_v3, %v2403_v7  ;;  %v3257_v9 = vpop.f32.mrf.mxu0 }
 0x31d   :  { %v2497_v14 = vsel %vm2394_vm9, %v3257_v9, 0.0 }
 0x31e   :  { %v2498_v11 = vadd.f32 %v2497_v14, %v2496_v5  ;;  %v1712_v51 = vpop.f32.mrf.mxu0 }
 0x31f   :  { %v2435_v23 = vsel %vm2394_vm9, %v1712_v51, 0.0 }
 0x320   :  { %v3264_v4 = vpop.f32.mrf.mxu0  ;;  %v2436_v42 = vadd.f32 %v2435_v23, %v2434_v63 }
 0x321   :  { %v2468_v0 = vsel %vm2394_vm9, %v3264_v4, 0.0 }
 0x322   :  { %v1776_v13 = vpop.f32.mrf.mxu0  ;;  %v2469_v33 = vadd.f32 %v2468_v0, %v2467_v34 }
 0x323   :  { %v2406_v38 = vsel %vm2394_vm9, %v1776_v13, 0.0 }
 0x324   :  { %v3265_v12 = vpop.f32.mrf.mxu0  ;;  %v2407_v15 = vadd.f32 %v2406_v38, %v2405_v43 }
 0x325   :  { %v2499_v37 = vsel %vm2394_vm9, %v3265_v12, 0.0 }
 0x326   :  { %v1779_v20 = vpop.f32.mrf.mxu0  ;;  %v2500_v62 = vadd.f32 %v2499_v37, %v2498_v11 }
 0x327   :  { %v2437_v54 = vsel %vm2394_vm9, %v1779_v20, 0.0 }
 0x328   :  { %v3272_v21 = vpop.f32.mrf.mxu0  ;;  %v2438_v59 = vadd.f32 %v2437_v54, %v2436_v42 }
 0x329   :  { %v2470_v41 = vsel %vm2394_vm9, %v3272_v21, 0.0 }
 0x32a   :  { %v1843_v22 = vpop.f32.mrf.mxu0  ;;  %v2471_v63 = vadd.f32 %v2470_v41, %v2469_v33 }
 0x32b   :  { %v2408_v40 = vsel %vm2394_vm9, %v1843_v22, 0.0 }
 0x32c   :  { %v3273_v36 = vpop.f32.mrf.mxu0  ;;  %v2409_v60 = vadd.f32 %v2408_v40, %v2407_v15 }
 0x32d   :  { %v2501_v8 = vsel %vm2394_vm9, %v3273_v36, 0.0 }
 0x32e   :  { %v1846_v27 = vpop.f32.mrf.mxu0  ;;  %v2502_v14 = vadd.f32 %v2501_v8, %v2500_v62 }
 0x32f   :  { %v2439_v58 = vsel %vm2394_vm9, %v1846_v27, 0.0 }
 0x330   :  { %v3280_v44 = vpop.f32.mrf.mxu0  ;;  %v2440_v1 = vadd.f32 %v2439_v58, %v2438_v59 }
 0x331   :  { %v2472_v61 = vsel %vm2394_vm9, %v3280_v44, 0.0 }
 0x332   :  { %v1910_v57 = vpop.f32.mrf.mxu0  ;;  %v2473_v51 = vadd.f32 %v2472_v61, %v2471_v63 }
 0x333   :  { %v2410_v28 = vsel %vm2394_vm9, %v1910_v57, 0.0 }
 0x334   :  { %v3281_v32 = vpop.f32.mrf.mxu0  ;;  %v2411_v6 = vadd.f32 %v2410_v28, %v2409_v60 }
 0x335   :  { %v2503_v3 = vsel %vm2394_vm9, %v3281_v32, 0.0 }
 0x336   :  { %v1913_v45 = vpop.f32.mrf.mxu0  ;;  %v2504_v36 = vadd.f32 %v2503_v3, %v2502_v14 }
 0x337   :  { %v2441_v5 = vsel %vm2394_vm9, %v1913_v45, 0.0 }
 0x338   :  { %v3288_v50 = vpop.f32.mrf.mxu0  ;;  %v2442_v4 = vadd.f32 %v2441_v5, %v2440_v1 }
 0x339   :  { %v2474_v34 = vsel %vm2394_vm9, %v3288_v50, 0.0 }
 0x33a   :  { %v1977_v52 = vpop.f32.mrf.mxu0  ;;  %v2475_v27 = vadd.f32 %v2474_v34, %v2473_v51 }
 0x33b   :  { %v2412_v47 = vsel %vm2394_vm9, %v1977_v52, 0.0 }
 0x33c   :  { %v3289_v48 = vpop.f32.mrf.mxu0  ;;  %v2413_v13 = vadd.f32 %v2412_v47, %v2411_v6 }
 0x33d   :  { %v2505_v20 = vsel %vm2394_vm9, %v3289_v48, 0.0 }
 0x33e   :  { %v1980_v19 = vpop.f32.mrf.mxu0  ;;  %v2506_v52 = vadd.f32 %v2505_v20, %v2504_v36 }
 0x33f   :  { %v2443_v43 = vsel %vm2394_vm9, %v1980_v19, 0.0 }
 0x340   :  { %v3296_v53 = vpop.f32.mrf.mxu0  ;;  %v2444_v44 = vadd.f32 %v2443_v43, %v2442_v4 }
 0x341   :  { %v2476_v11 = vsel %vm2394_vm9, %v3296_v53, 0.0 }
 0x342   :  { %v2044_v55 = vpop.f32.mrf.mxu0  ;;  %v2477_v48 = vadd.f32 %v2476_v11, %v2475_v27 }
 0x343   :  { %v2414_v9 = vsel %vm2394_vm9, %v2044_v55, 0.0 }
 0x344   :  { %v3297_v46 = vpop.f32.mrf.mxu0  ;;  %v2415_v57 = vadd.f32 %v2414_v9, %v2413_v13 }
 0x345   :  { %v2507_v45 = vsel %vm2394_vm9, %v3297_v46, 0.0 }
 0x346   :  { %v2047_v56 = vpop.f32.mrf.mxu0  ;;  %v2508_v46 = vadd.f32 %v2507_v45, %v2506_v52 }
 0x347   :  { %v2445_v21 = vsel %vm2394_vm9, %v2047_v56, 0.0 }
 0x348   :  { %v3304_v35 = vpop.f32.mrf.mxu0  ;;  %v2446_v19 = vadd.f32 %v2445_v21, %v2444_v44 }
 0x349   :  { %v2478_v49 = vsel %vm2394_vm9, %v3304_v35, 0.0 }
 0x34a   :  { %v2111_v24 = vpop.f32.mrf.mxu0  ;;  %v2479_v0 = vadd.f32 %v2478_v49, %v2477_v48 }
 0x34b   :  { %v2416_v22 = vsel %vm2394_vm9, %v2111_v24, 0.0 }
 0x34c   :  { %v3305_v10 = vpop.f32.mrf.mxu0  ;;  %v2417_v53 = vadd.f32 %v2416_v22, %v2415_v57 }
 0x34d   :  { %v2509_v56 = vsel %vm2394_vm9, %v3305_v10, 0.0 }
 0x34e   :  { %v2114_v18 = vpop.f32.mrf.mxu0 }
 0x34f   :  { %v2447_v29 = vsel %vm2394_vm9, %v2114_v18, 0.0 }
 0x350   :  { %v3312_v25 = vpop.f32.mrf.mxu0  ;;  %v2448_v35 = vadd.f32 %v2447_v29, %v2446_v19 }
 0x351   :  { %v2480_v24 = vsel %vm2394_vm9, %v3312_v25, 0.0  ;;  %v2510_v25 = vadd.f32 %v2509_v56, %v2508_v46 }
 0x352   :  { %v2178_v26 = vpop.f32.mrf.mxu0  ;;  %v2481_v15 = vadd.f32 %v2480_v24, %v2479_v0 }
 0x353   :  { %v2418_v50 = vsel %vm2394_vm9, %v2178_v26, 0.0 }
 0x354   :  { %v4238_v17 = vpop.f32.mrf.mxu0  ;;  %v2419_v54 = vadd.f32 %v2418_v50, %v2417_v53 }
 0x355   :  { %v2511_v26 = vsel %vm2394_vm9, %v4238_v17, 0.0 }
 0x356   :  { %v2181_v30 = vpop.f32.mrf.mxu0  ;;  %v2512_v33 = vadd.f32 %v2511_v26, %v2510_v25 }
 0x357   :  { %v2449_v23 = vsel %vm2394_vm9, %v2181_v30, 0.0 }
 0x358   :  { %v4240_v31 = vpop.f32.mrf.mxu0  ;;  %v2450_v30 = vadd.f32 %v2449_v23, %v2448_v35 }
 0x359   :  { %v2482_v40 = vsel %vm2394_vm9, %v4240_v31, 0.0 }
 0x35a   :  { %v2245_v39 = vpop.f32.mrf.mxu0  ;;  %v2483_v31 = vadd.f32 %v2482_v40, %v2481_v15  ;;  %v2983_v15 = vld [vmem:[%s4319_s6] ss:$0 sm:$0xff] }
 0x35b   :  { %v2420_v38 = vsel %vm2394_vm9, %v2245_v39, 0.0 }
 0x35c   :  { %v4247_v16 = vpop.f32.mrf.mxu0  ;;  %v2421_v37 = vadd.f32 %v2420_v38, %v2419_v54 }
 0x35d   :  { %v2513_v41 = vsel %vm2394_vm9, %v4247_v16, 0.0 }
 0x35e   :  { %v2248_v7 = vpop.f32.mrf.mxu0  ;;  %v2514_v5 = vadd.f32 %v2513_v41, %v2512_v33 }
 0x35f   :  { %v2451_v42 = vsel %vm2394_vm9, %v2248_v7, 0.0 }
 0x360   :  { %v3328_v2 = vpop.f32.mrf.mxu0  ;;  %v2452_v59 = vadd.f32 %v2451_v42, %v2450_v30 }
 0x361   :  { %v2484_v58 = vsel %vm2394_vm9, %v3328_v2, 0.0 }
 0x362   :  { %v2312_v12 = vpop.f32.mrf.mxu0  ;;  %v2485_v47 = vadd.f32 %v2484_v58, %v2483_v31  ;;  %v2984_v58 = vld [vmem:[%s4320_s7] ss:$0 sm:$0xff] }
 0x363   :  { %v2422_v10 = vsel %vm2394_vm9, %v2312_v12, 0.0 }
 0x364   :  { %v3329_v32 = vpop.f32.mrf.mxu0  ;;  %v2423_v60 = vadd.f32 %v2422_v10, %v2421_v37 }
 0x365   :  { %v2515_v8 = vsel %vm2394_vm9, %v3329_v32, 0.0 }
 0x366   :  { %v2315_v55 = vpop.f32.mrf.mxu0  ;;  %v2516_v2 = vadd.f32 %v2515_v8, %v2514_v5 }
 0x367   :  { %v2453_v28 = vsel %vm2394_vm9, %v2315_v55, 0.0 }
 0x368   :  { %v3336_v18 = vpop.f32.mrf.mxu0  ;;  %v2454_v62 = vadd.f32 %v2453_v28, %v2452_v59 }
 0x369   :  { %v2486_v61 = vsel %vm2394_vm9, %v3336_v18, 0.0 }
 0x36a   :  { %v2379_v39 = vpop.f32.mrf.mxu0  ;;  %v2487_v3 = vadd.f32 %v2486_v61, %v2485_v47 }
 0x36b   :  { %v2424_v17 = vsel %vm2394_vm9, %v2379_v39, 0.0 }
 0x36c   :  { %v3337_v7 = vpop.f32.mrf.mxu0  ;;  %v2425_v63 = vadd.f32 %v2424_v17, %v2423_v60  ;;  %v2524_v4 = vsel %vm2394_vm9, %v2487_v3, 0.0 }
 0x36d   :  { %v2517_v1 = vsel %vm2394_vm9, %v3337_v7, 0.0 }
 0x36e   :  { %v2382_v16 = vpop.f32.mrf.mxu0  ;;  %v2521_v43 = vsel %vm2394_vm9, %v2425_v63, 0.0  ;;  %v2518_v9 = vadd.f32 %v2517_v1, %v2516_v2 }
 0x36f   :  { %v2455_v6 = vsel %vm2394_vm9, %v2382_v16, 0.0 }
 0x370   :  { %v2456_v34 = vadd.f32 %v2455_v6, %v2454_v62  ;;  %v2526_v12 = vsel %vm2394_vm9, %v2518_v9, 0.0 }
 0x372   :  { %v2522_v14 = vsel %vm2394_vm9, %v2456_v34, 0.0 }
 0x373   :  { %v2523_v51 = vadd.f32 %v2522_v14, %v2521_v43 }
 0x375   :  { %v2525_v13 = vadd.f32 %v2524_v4, %v2523_v51 }
 0x377   :  { %v2527_v20 = vadd.f32 %v2526_v12, %v2525_v13 }
 0x379   :  { %v2528_v11 = vrot.slane %v2527_v20, 4 }
 0x37b   :  { %v2529_v21 = vadd.f32 %v2528_v11, %v2527_v20 }
 0x37d   :  { %v2530_v22 = vrot.slane %v2529_v21, 2 }
 0x37f   :  { %v2531_v36 = vadd.f32 %v2530_v22, %v2529_v21 }
 0x381   :  { %v2532_v27 = vrot.slane %v2531_v36, 1 }
 0x383   :  { %v2533_v44 = vadd.f32 %v2532_v27, %v2531_v36 }
 0x385   :  { %v2534_v57 = vmul.f32 0.03125, %v2533_v44 }
 0x387   :  { %v2535_v32 = vsub.f32 %v2425_v63, %v2534_v57  ;;  %v2536_v45 = vsub.f32 %v2456_v34, %v2534_v57  ;;  %v2537_v49 = vsub.f32 %v2487_v3, %v2534_v57  ;;  %v2538_v29 = vsub.f32 %v2518_v9, %v2534_v57 }
 0x389   :  { %v2539_v50 = vmul.f32 %v2535_v32, %v2535_v32  ;;  %v2540_v52 = vmul.f32 %v2536_v45, %v2536_v45  ;;  %v2541_v48 = vmul.f32 %v2537_v49, %v2537_v49  ;;  %v2542_v19 = vmul.f32 %v2538_v29, %v2538_v29 }
 0x38b   :  { %v2543_v53 = vsel %vm2394_vm9, %v2539_v50, 0.0  ;;  %v2544_v55 = vsel %vm2394_vm9, %v2540_v52, 0.0  ;;  %v2546_v24 = vsel %vm2394_vm9, %v2541_v48, 0.0  ;;  %v2548_v38 = vsel %vm2394_vm9, %v2542_v19, 0.0 }
 0x38c   :  { %v2545_v56 = vadd.f32 %v2544_v55, %v2543_v53 }
 0x38e   :  { %v2547_v23 = vadd.f32 %v2546_v24, %v2545_v56 }
 0x390   :  { %v2549_v46 = vadd.f32 %v2548_v38, %v2547_v23 }
 0x392   :  { %v2550_v0 = vrot.slane %v2549_v46, 4 }
 0x394   :  { %v2551_v35 = vadd.f32 %v2550_v0, %v2549_v46 }
 0x396   :  { %v2552_v54 = vrot.slane %v2551_v35, 2 }
 0x398   :  { %v2553_v18 = vadd.f32 %v2552_v54, %v2551_v35 }
 0x39a   :  { %v2554_v26 = vrot.slane %v2553_v18, 1 }
 0x39c   :  { %v2555_v40 = vadd.f32 %v2554_v26, %v2553_v18  ;;  %v2991_v18 = vld [vmem:[%s4322_s9] ss:$0 sm:$0xff]  ;;  %s3408_s9 = scalar_lea.vmem %s2762_s23, 512 }
 0x39d   :  { %p3409_p0 = scmp.ne.s32.totalorder %s2762_s23, %s3408_s9  ;;  %p3414_p2 = scmp.lt.s32.totalorder %s3408_s9, %s3408_s9 }
 0x39e   :  { %v2556_v42 = vmul.f32 0.03125, %v2555_v40 }
 0x39f   :  { %p3415_p3 = por %p3414_p2, %p3413_p1 }
 0x3a0   :  { %v2557_v10 = vadd.f32 1e-05, %v2556_v42 }
 0x3a1   :  { %p3416_p4 = pnand %p3415_p3, %p3409_p0 }
 0x3a2   :  { %3404 = vrsqrt.f32 %v2557_v10 }
 0x3af   :  { %v3405_v25 = vpop.eup %3404 }
 0x3b0   :  { %v2559_v30 = vmul.f32 %v3405_v25, %v2535_v32  ;;  %v2560_v37 = vmul.f32 %v3405_v25, %v2536_v45  ;;  %v2561_v39 = vmul.f32 %v3405_v25, %v2537_v49  ;;  %v2562_v41 = vmul.f32 %v3405_v25, %v2538_v29  ;;  %v2992_v25 = vld [vmem:[%s4323_s10] ss:$0 sm:$0xff] }
 0x3b2   :  { %v2570_v28 = vmul.f32 %v2983_v15, %v2560_v37  ;;  %v2571_v17 = vmul.f32 %v2983_v15, %v2561_v39  ;;  %v2572_v33 = vmul.f32 %v2983_v15, %v2562_v41  ;;  %v2569_v31 = vmul.f32 %v2983_v15, %v2559_v30 }
 0x3b4   :  { %v2580_v59 = vadd.f32 %v2984_v58, %v2570_v28  ;;  %v2581_v60 = vadd.f32 %v2984_v58, %v2571_v17  ;;  %v2582_v7 = vadd.f32 %v2984_v58, %v2572_v33  ;;  %v2579_v8 = vadd.f32 %v2984_v58, %v2569_v31 }
 0x3b6   :  { %v2589_v61 = vmul.f32 0.01, %v2581_v60  ;;  %v2590_v5 = vmul.f32 0.01, %v2582_v7  ;;  %vm2583_vm1 = vcmp.ge.f32.partialorder %v2579_v8, 0.0  ;;  %vm2584_vm10 = vcmp.ge.f32.partialorder %v2580_v59, 0.0 }
 0x3b7   :  { %v2587_v47 = vmul.f32 0.01, %v2579_v8  ;;  %v2588_v62 = vmul.f32 0.01, %v2580_v59  ;;  %vm2585_vm11 = vcmp.ge.f32.partialorder %v2581_v60, 0.0  ;;  %vm2586_vm12 = vcmp.ge.f32.partialorder %v2582_v7, 0.0 }
 0x3b8   :  { %v2593_v63 = vsel %vm2585_vm11, %v2581_v60, %v2589_v61  ;;  %v2594_v16 = vsel %vm2586_vm12, %v2582_v7, %v2590_v5 }
 0x3b9   :  { %v2591_v1 = vsel %vm2583_vm1, %v2579_v8, %v2587_v47  ;;  %v2592_v6 = vsel %vm2584_vm10, %v2580_v59, %v2588_v62  ;;  %v2596_v2 = vpack.c.bf16 %v2594_v16, %v2593_v63 }
 0x3ba   :  { %v2595_v3 = vpack.c.bf16 %v2592_v6, %v2591_v1 }
 0x3bc   :  { %3346 = vmatprep.mubr.msk.bf16.mxu1 %vm2394_vm9, %v2595_v3 }
 0x3bd   :  { %3347 = vmatmul.mubr.msk.bf16.vlgmr.msra.gmra.mxu1 %vm2394_vm9, %v2596_v2 }
 0x47d   :  { %v3348_v34 = vpop.f32.mrf.mxu1 }
 0x47f   :  { %v2669_v43 = vpop.f32.mrf.mxu1 }
 0x481   :  { %v3349_v9 = vpop.f32.mrf.mxu1 }
 0x483   :  { %v2672_v14 = vpop.f32.mrf.mxu1 }
 0x484   :  { %v2686_v51 = vadd.f32 %v2672_v14, %v2669_v43 }
 0x486   :  { %v2687_v4 = vadd.f32 %v3348_v34, %v2686_v51 }
 0x488   :  { %v2688_v13 = vadd.f32 %v3349_v9, %v2687_v4 }
 0x48a   :  { %v2689_v12 = vrot.slane %v2688_v13, 4 }
 0x48c   :  { %v2690_v20 = vadd.f32 %v2689_v12, %v2688_v13 }
 0x48e   :  { %v2691_v11 = vrot.slane %v2690_v20, 2 }
 0x490   :  { %v2692_v21 = vadd.f32 %v2691_v11, %v2690_v20 }
 0x492   :  { %v2693_v22 = vrot.slane %v2692_v21, 1 }
 0x494   :  { %v2694_v36 = vadd.f32 %v2693_v22, %v2692_v21 }
 0x496   :  { %v2695_v27 = vmul.f32 0.03125, %v2694_v36 }
 0x498   :  { %v2696_v44 = vsub.f32 %v2669_v43, %v2695_v27  ;;  %v2697_v57 = vsub.f32 %v2672_v14, %v2695_v27  ;;  %v2698_v32 = vsub.f32 %v3348_v34, %v2695_v27  ;;  %v2699_v45 = vsub.f32 %v3349_v9, %v2695_v27 }
 0x49a   :  { %v2700_v49 = vmul.f32 %v2696_v44, %v2696_v44  ;;  %v2701_v29 = vmul.f32 %v2697_v57, %v2697_v57  ;;  %v2702_v50 = vmul.f32 %v2698_v32, %v2698_v32  ;;  %v2703_v48 = vmul.f32 %v2699_v45, %v2699_v45 }
 0x49c   :  { %v2704_v52 = vadd.f32 %v2701_v29, %v2700_v49 }
 0x49e   :  { %v2705_v19 = vadd.f32 %v2704_v52, %v2702_v50 }
 0x4a0   :  { %v2706_v53 = vadd.f32 %v2705_v19, %v2703_v48 }
 0x4a2   :  { %v2707_v55 = vrot.slane %v2706_v53, 4 }
 0x4a4   :  { %v2708_v56 = vadd.f32 %v2707_v55, %v2706_v53 }
 0x4a6   :  { %v2709_v24 = vrot.slane %v2708_v56, 2 }
 0x4a8   :  { %v2710_v23 = vadd.f32 %v2709_v24, %v2708_v56 }
 0x4aa   :  { %v2711_v38 = vrot.slane %v2710_v23, 1 }
 0x4ac   :  { %v2712_v46 = vadd.f32 %v2711_v38, %v2710_v23 }
 0x4ae   :  { %v2713_v0 = vmul.f32 0.03125, %v2712_v46 }
 0x4b0   :  { %v2714_v35 = vadd.f32 1e-05, %v2713_v0 }
 0x4b2   :  { %3406 = vrsqrt.f32 %v2714_v35 }
 0x4bf   :  { %v3407_v54 = vpop.eup %3406 }
 0x4c0   :  { %v2716_v26 = vmul.f32 %v3407_v54, %v2696_v44  ;;  %v2717_v40 = vmul.f32 %v3407_v54, %v2697_v57  ;;  %v2718_v42 = vmul.f32 %v3407_v54, %v2698_v32  ;;  %v2719_v10 = vmul.f32 %v3407_v54, %v2699_v45 }
 0x4c2   :  { %v2726_v15 = vmul.f32 %v2991_v18, %v2716_v26  ;;  %v2727_v30 = vmul.f32 %v2991_v18, %v2717_v40  ;;  %v2728_v37 = vmul.f32 %v2991_v18, %v2718_v42  ;;  %v2729_v39 = vmul.f32 %v2991_v18, %v2719_v10 }
 0x4c4   :  { %v2736_v41 = vadd.f32 %v2992_v25, %v2726_v15  ;;  %v2737_v58 = vadd.f32 %v2992_v25, %v2727_v30  ;;  %v2738_v28 = vadd.f32 %v2992_v25, %v2728_v37  ;;  %v2739_v17 = vadd.f32 %v2992_v25, %v2729_v39 }
 0x4c6   :  { %vm2741_vm13 = vcmp.ge.f32.partialorder %v2737_v58, 0.0  ;;  %v2744_v33 = vmul.f32 0.01, %v2736_v41  ;;  %v2745_v31 = vmul.f32 0.01, %v2737_v58  ;;  %vm2740_vm14 = vcmp.ge.f32.partialorder %v2736_v41, 0.0 }
 0x4c7   :  { %v2746_v59 = vmul.f32 0.01, %v2738_v28  ;;  %v2747_v60 = vmul.f32 0.01, %v2739_v17  ;;  %vm2742_vm15 = vcmp.ge.f32.partialorder %v2738_v28, 0.0  ;;  %vm2743_vm0 = vcmp.ge.f32.partialorder %v2739_v17, 0.0 }
 0x4c8   :  { %v2749_v7 = vsel %vm2741_vm13, %v2737_v58, %v2745_v31  ;;  %v2748_v8 = vsel %vm2740_vm14, %v2736_v41, %v2744_v33 }
 0x4c9   :  { %2753 = vst [vmem:[#allocation2 + $0x8] sm:$0xff] %v2749_v7  ;;  %v2750_v61 = vsel %vm2742_vm15, %v2738_v28, %v2746_v59  ;;  %v2751_v5 = vsel %vm2743_vm0, %v2739_v17, %v2747_v60  ;;  %2752 = vst [vmem:[#allocation2] sm:$0xff] %v2748_v8 }
 0x4ca   :  { %2754 = vst [vmem:[#allocation2 + $0x10] sm:$0xff] %v2750_v61  ;;  %2755 = vst [vmem:[#allocation2 + $0x18] sm:$0xff] %v2751_v5 }
 0x4cb   :  { %3419 = shalt.err (!%p3416_p4)
}
 0x4cc   :  { %s3433_s10 = smov 128   ;;  %s3434_s24 = smov 8  }
 0x4cd   :  { %2767 = dma.vmem_to_hbm [thread:$0]  %s2762_s23, 512, %s4324_s11, [#allocation3], %s3433_s10, %s3433_s10, %s3434_s24  }
 0x4ce   :  { %3428 = dma.done.wait [#allocation3], 512  }
 0x4cf   :  { %3429 = vsyncadd [#allocation3], 4294966784 }
 0x4d0   :  { %2771 = vsyncpa [#allocation3], 1 }

</bundles_post_ra>
